<compile_context>
chip_gen: v7x
topology: tpu7x:2x2x1
jax: 0.10.0
libtpu: 0.0.40
codegen_flags: <defaults>
</compile_context>

<pallas_src>
import jax
import jax.numpy as jnp
from jax import lax
from jax.experimental import pallas as pl
from jax.experimental.pallas import tpu as pltpu

LSTM_HIDDEN = 100
INPUT_SIZE = 5
HIDDEN_PAD = 128  # lane-aligned padded hidden size (do NOT pad to 256)

# MXU operand dtype.  jnp.bfloat16 is faster on v6e/v7x (native bf16 MXU) and
# halves resident weight bytes, but is a small numerics change vs. the f32
# reference; keep f32 by default so tight tolerances hold.  Gate/elementwise
# math stays f32 either way.
MXU_DTYPE = jnp.float32


def _lstm_chunk_kernel(x_ref, wih_ref, whh_ref, b_ref, hlast_ref, h_scr, c_scr):
    """One (batch-tile, time-chunk) grid step of the LSTM recurrence.

    x_ref:     (TT, TB, I)   time-major input chunk
    wih_ref:   (I, 4*Hp)     input->gates weight (transposed, per-gate padded)
    whh_ref:   (Hp, 4*Hp)    hidden->gates weight (transposed, padded)
    b_ref:     (1, 4*Hp)     combined bias b_ih + b_hh (per-gate padded)
    hlast_ref: (TB, Hp)      h at the final timestep (lane-dense output)
    h_scr/c_scr: (TB, Hp)    recurrent state carried across time chunks
    """
    t_chunk = pl.program_id(1)
    TT, TB, _ = x_ref.shape
    Hp = whh_ref.shape[0]

    @pl.when(t_chunk == 0)
    def _():
        h_scr[...] = jnp.zeros_like(h_scr)
        c_scr[...] = jnp.zeros_like(c_scr)

    wih = wih_ref[...].astype(MXU_DTYPE)
    whh = whh_ref[...].astype(MXU_DTYPE)
    # Hoist the bias broadcast once (JAX does not CSE broadcast_in_dim).
    bias = jnp.broadcast_to(b_ref[...], (TB, 4 * Hp))

    def step(x_t, h, c):
        # Input projection has no serial dependence on h/c: computing it here
        # per-step keeps the live set O(1) tiles while the scheduler still
        # overlaps it with the previous step's h @ W_hh.
        # (Alternative for tiny, latency-bound B*T: hoist x@W_ih+bias into the
        # wrapper and stream a lane-dense (T, TB, 512) xgates input instead.)
        xg = jnp.dot(x_t.astype(MXU_DTYPE), wih,
                     preferred_element_type=jnp.float32) + bias
        gates = xg + jnp.dot(h.astype(MXU_DTYPE), whh,
                             preferred_element_type=jnp.float32)
        # Gate slices start at multiples of Hp=128 -> lane-aligned free views.
        # PyTorch gate order: i, f, g, o.
        i_g = jax.nn.sigmoid(gates[:, 0 * Hp:1 * Hp])
        f_g = jax.nn.sigmoid(gates[:, 1 * Hp:2 * Hp])
        g_g = jnp.tanh(gates[:, 2 * Hp:3 * Hp])
        o_g = jax.nn.sigmoid(gates[:, 3 * Hp:4 * Hp])
        c = f_g * c + i_g * g_g
        h = o_g * jnp.tanh(c)
        return h, c

    h = h_scr[...]
    c = c_scr[...]
    if TT <= 8:
        # Small chunk: full static unroll (live ranges already bounded).
        for t in range(TT):
            h, c = step(x_ref[t], h, c)
    else:
        # Larger chunk: lightly unrolled fori_loop keeps scheduler visibility
        # while capping code size / vreg pressure.
        def body(t, hc):
            return step(x_ref[t], hc[0], hc[1])
        h, c = lax.fori_loop(0, TT, body, (h, c), unroll=4)

    h_scr[...] = h
    c_scr[...] = c

    @pl.when(t_chunk == pl.num_programs(1) - 1)
    def _():
        hlast_ref[...] = h


def _pad_gate_cols(w, h, hp):
    """Pad the 4 gate blocks (PyTorch order i,f,g,o) along the last axis h->hp with zeros."""
    lead = w.shape[:-1]
    w4 = w.reshape(lead + (4, h))
    w4 = jnp.pad(w4, [(0, 0)] * len(lead) + [(0, 0), (0, hp - h)])
    return w4.reshape(lead + (4 * hp,))


def _pick_batch_tile(b):
    """Batch tile so the batch grid has >=2 (ideally even) steps: keeps both
    v7x TensorCores busy while keeping per-grid-step overhead small."""
    if b % 8 != 0 or b <= 8:
        return b                        # tiny / sublane-misaligned batch: one tile
    for ng in (2, 4, 8, 6, 3, 5, 7):    # prefer an even grid of 2-8 steps
        if b % ng == 0 and (b // ng) % 8 == 0:
            tb = b // ng
            while tb > 512 and tb % 16 == 0:   # keep per-tile VMEM bounded
                tb //= 2
            return tb
    for tb in (512, 256, 128, 64, 32, 16, 8):  # fallback
        if b % tb == 0:
            return tb
    return b


def _pick_time_chunk(t):
    """Largest divisor of T that is <= 16 (bounds in-kernel unroll and the
    resident x chunk, independent of total T)."""
    if t <= 16:
        return t
    for tt in range(16, 0, -1):
        if t % tt == 0:
            return tt
    return t


@jax.jit
def cpg_predictor_forward(x, params):
    """x: (B, T, I) batch-first (PyTorch convention). Returns (B, 1) logits."""
    B, T, I = x.shape
    H, Hp = LSTM_HIDDEN, HIDDEN_PAD

    x_tm = jnp.transpose(x, (1, 0, 2)).astype(jnp.float32)                  # (T, B, I)

    w_ih_p = _pad_gate_cols(params["w_ih"].T.astype(jnp.float32), H, Hp)    # (I, 4Hp)
    w_hh_p = _pad_gate_cols(params["w_hh"].T.astype(jnp.float32), H, Hp)    # (H, 4Hp)
    w_hh_p = jnp.pad(w_hh_p, ((0, Hp - H), (0, 0)))                         # (Hp, 4Hp)
    bias_p = _pad_gate_cols(
        (params["b_ih"] + params["b_hh"]).astype(jnp.float32), H, Hp)[None, :]  # (1, 4Hp)

    TB = _pick_batch_tile(B)
    TT = _pick_time_chunk(T)
    grid = (B // TB, T // TT)

    # Lane/sublane-padding-aware resident-set estimate -> scoped VMEM budget,
    # clamped to 48 MiB (headroom under v7x's 64 MiB per-TC VMEM).
    f32 = 4
    tbp = ((TB + 7) // 8) * 8
    est = f32 * (
        2 * TT * tbp * 128             # x chunk: I=5 lane-padded to 128, 2 buffers
        + 2 * tbp * Hp                 # h_last output block, 2 buffers
        + (8 + Hp + 8) * 4 * Hp        # wih + whh + bias, single-buffered
        + 2 * tbp * Hp                 # h / c scratch
        + 6 * tbp * 4 * Hp             # in-flight gates / xg working set
    )
    vmem_limit = int(min(48 * 1024 * 1024, max(32 * 1024 * 1024, 2 * est)))

    const_block = dict(pipeline_mode=pl.Buffered(1))  # fetched once; no 2nd copy

    h_last = pl.pallas_call(
        _lstm_chunk_kernel,
        out_shape=jax.ShapeDtypeStruct((B, Hp), jnp.float32),
        grid=grid,
        in_specs=[
            pl.BlockSpec((TT, TB, I), lambda b, t: (t, b, 0)),
            pl.BlockSpec((I, 4 * Hp), lambda b, t: (0, 0), **const_block),
            pl.BlockSpec((Hp, 4 * Hp), lambda b, t: (0, 0), **const_block),
            pl.BlockSpec((1, 4 * Hp), lambda b, t: (0, 0), **const_block),
        ],
        out_specs=pl.BlockSpec((TB, Hp), lambda b, t: (b, 0)),
        scratch_shapes=[
            pltpu.VMEM((TB, Hp), jnp.float32),   # h carry
            pltpu.VMEM((TB, Hp), jnp.float32),   # c carry
        ],
        compiler_params=pltpu.CompilerParams(
            dimension_semantics=("parallel", "arbitrary"),
            vmem_limit_bytes=vmem_limit,
        ),
    )(x_tm, w_ih_p, w_hh_p, bias_p)

    # Lane-dense kernel output; the 100->1 classifier + bias stay in XLA
    # (avoids masked last-dim-1 stores and an N=1 MXU matmul in-kernel).
    return (h_last[:, :H] @ params["w_cls"].T.astype(jnp.float32)
            + params["b_cls"].astype(jnp.float32)[None, :])


def init_params(key):
    """Deterministic init matching the PyTorch module's parameter shapes."""
    H, I = LSTM_HIDDEN, INPUT_SIZE
    k = jax.random.split(key, 6)
    bound = 1.0 / jnp.sqrt(H)
    u = lambda kk, shape: jax.random.uniform(
        kk, shape, jnp.float32, minval=-bound, maxval=bound)
    return {
        "w_ih": u(k[0], (4 * H, I)),    # weight_ih_l0
        "w_hh": u(k[1], (4 * H, H)),    # weight_hh_l0
        "b_ih": u(k[2], (4 * H,)),      # bias_ih_l0
        "b_hh": u(k[3], (4 * H,)),      # bias_hh_l0
        "w_cls": u(k[4], (1, H)),       # classifier.weight
        "b_cls": u(k[5], (1,)),         # classifier.bias
    }


def reference_forward(x, params):
    """Pure-JAX (XLA) reference matching torch.nn.LSTM(batch_first) + Linear."""
    H = LSTM_HIDDEN
    B = x.shape[0]
    w_ih_t = params["w_ih"].T
    w_hh_t = params["w_hh"].T
    bias = params["b_ih"] + params["b_hh"]

    def step(carry, x_t):
        h, c = carry
        gates = x_t @ w_ih_t + h @ w_hh_t + bias
        i = jax.nn.sigmoid(gates[:, 0 * H:1 * H])
        f = jax.nn.sigmoid(gates[:, 1 * H:2 * H])
        g = jnp.tanh(gates[:, 2 * H:3 * H])
        o = jax.nn.sigmoid(gates[:, 3 * H:4 * H])
        c = f * c + i * g
        h = o * jnp.tanh(c)
        return (h, c), None

    h0 = jnp.zeros((B, H), jnp.float32)
    c0 = jnp.zeros((B, H), jnp.float32)
    (h_last, _), _ = lax.scan(step, (h0, c0), jnp.transpose(x, (1, 0, 2)))
    return h_last @ params["w_cls"].T + params["b_cls"][None, :]


if __name__ == "__main__":
    key = jax.random.PRNGKey(0)
    k_param, k_x = jax.random.split(key)

    B, T, I = 2, 8, INPUT_SIZE
    params = init_params(k_param)
    x = jax.random.normal(k_x, (B, T, I), dtype=jnp.float32)

    logits = cpg_predictor_forward(x, params)
    jax.block_until_ready(logits)
    assert logits.shape == (B, 1)

    ref = reference_forward(x, params)
    max_err = float(jnp.max(jnp.abs(logits - ref)))
    assert bool(jnp.allclose(logits, ref, rtol=2e-3, atol=2e-3)), (
        f"kernel/reference mismatch, max abs err = {max_err}")

    print("KERNEL_OK")
</pallas_src>

<mosaic_0001>
module attributes {stable_mosaic.version = 11 : i64} {
  func.func @_lstm_chunk_kernel(%arg0: i32, %arg1: i32, %arg2: memref<8x2x5xf32, #tpu.memory_space<vmem>>, %arg3: memref<5x512xf32, #tpu.memory_space<vmem>>, %arg4: memref<128x512xf32, #tpu.memory_space<vmem>>, %arg5: memref<1x512xf32, #tpu.memory_space<vmem>>, %arg6: memref<2x128xf32, #tpu.memory_space<vmem>>, %arg7: memref<2x128xf32, #tpu.memory_space<vmem>>, %arg8: memref<2x128xf32, #tpu.memory_space<vmem>>) attributes {dimension_semantics = [#tpu.dimension_semantics<parallel>, #tpu.dimension_semantics<arbitrary>], iteration_bounds = array<i64: 1, 1>, scalar_prefetch = 0 : i64, scratch_operands = 2 : i64, tpu.core_type = #tpu.core_type<tc>, window_params = [{transform_indices = @transform_0, window_bounds = array<i64: 8, 2, 5>}, {pipeline_mode = #tpu.pipeline_mode<synchronous>, transform_indices = @transform_1, window_bounds = array<i64: 5, 512>}, {pipeline_mode = #tpu.pipeline_mode<synchronous>, transform_indices = @transform_2, window_bounds = array<i64: 128, 512>}, {pipeline_mode = #tpu.pipeline_mode<synchronous>, transform_indices = @transform_3, window_bounds = array<i64: 1, 512>}, {transform_indices = @transform_4, window_bounds = array<i64: 2, 128>}]} {
    %c0_i32 = arith.constant 0 : i32
    %0 = arith.cmpi eq, %arg1, %c0_i32 : i32
    %1 = arith.extui %0 : i1 to i32
    %c0_i32_0 = arith.constant 0 : i32
    %2 = arith.cmpi ne, %1, %c0_i32_0 : i32
    scf.if %2 {
      %cst_72 = arith.constant 0.000000e+00 : f32
      %263 = vector.broadcast %cst_72 : f32 to vector<2x128xf32>
      %c0_73 = arith.constant 0 : index
      %c0_74 = arith.constant 0 : index
      %264 = vector.load %arg7[%c0_73, %c0_74] : memref<2x128xf32, #tpu.memory_space<vmem>>, vector<2x128xf32>
      tpu.vector_store %arg7[%c0_73, %c0_74], %263 {strides = array<i32>} : memref<2x128xf32, #tpu.memory_space<vmem>>, vector<2x128xf32>,
      %cst_75 = arith.constant 0.000000e+00 : f32
      %265 = vector.broadcast %cst_75 : f32 to vector<2x128xf32>
      %c0_76 = arith.constant 0 : index
      %c0_77 = arith.constant 0 : index
      %266 = vector.load %arg8[%c0_76, %c0_77] : memref<2x128xf32, #tpu.memory_space<vmem>>, vector<2x128xf32>
      tpu.vector_store %arg8[%c0_76, %c0_77], %265 {strides = array<i32>} : memref<2x128xf32, #tpu.memory_space<vmem>>, vector<2x128xf32>,
    } else {
    }
    %c0 = arith.constant 0 : index
    %c0_1 = arith.constant 0 : index
    %3 = vector.load %arg3[%c0, %c0_1] : memref<5x512xf32, #tpu.memory_space<vmem>>, vector<5x512xf32>
    %c0_2 = arith.constant 0 : index
    %c0_3 = arith.constant 0 : index
    %4 = vector.load %arg4[%c0_2, %c0_3] : memref<128x512xf32, #tpu.memory_space<vmem>>, vector<128x512xf32>
    %c0_4 = arith.constant 0 : index
    %c0_5 = arith.constant 0 : index
    %5 = vector.load %arg5[%c0_4, %c0_5] : memref<1x512xf32, #tpu.memory_space<vmem>>, vector<1x512xf32>
    %6 = vector.shape_cast %5 : vector<1x512xf32> to vector<1x512xf32>
    %7 = vector.broadcast %6 : vector<1x512xf32> to vector<2x512xf32>
    %c0_6 = arith.constant 0 : index
    %c0_7 = arith.constant 0 : index
    %8 = vector.load %arg7[%c0_6, %c0_7] : memref<2x128xf32, #tpu.memory_space<vmem>>, vector<2x128xf32>
    %c0_8 = arith.constant 0 : index
    %c0_9 = arith.constant 0 : index
    %9 = vector.load %arg8[%c0_8, %c0_9] : memref<2x128xf32, #tpu.memory_space<vmem>>, vector<2x128xf32>
    %c0_10 = arith.constant 0 : index
    %c0_11 = arith.constant 0 : index
    %c0_12 = arith.constant 0 : index
    %10 = vector.load %arg2[%c0_10, %c0_11, %c0_12] : memref<8x2x5xf32, #tpu.memory_space<vmem>>, vector<1x2x5xf32>
    %11 = vector.shape_cast %10 : vector<1x2x5xf32> to vector<2x5xf32>
    %cst = arith.constant dense<0.000000e+00> : vector<2x512xf32>
    %12 = tpu.matmul %11, %3, %cst {dimension_numbers = #tpu.dot_dimension_numbers<[1], [0], [0], [1], [0, 0, 1, 1], [], []>} : vector<2x5xf32>, vector<5x512xf32>, vector<2x512xf32> -> vector<2x512xf32>
    %13 = arith.addf %12, %7 : vector<2x512xf32>
    %cst_13 = arith.constant dense<0.000000e+00> : vector<2x512xf32>
    %14 = tpu.matmul %8, %4, %cst_13 {dimension_numbers = #tpu.dot_dimension_numbers<[1], [0], [0], [1], [0, 0, 1, 1], [], []>} : vector<2x128xf32>, vector<128x512xf32>, vector<2x512xf32> -> vector<2x512xf32>
    %15 = arith.addf %13, %14 : vector<2x512xf32>
    %16 = vector.extract_strided_slice %15 {offsets = [0, 0], sizes = [2, 128], strides = [1, 1]} : vector<2x512xf32> to vector<2x128xf32>
    %17 = arith.negf %16 : vector<2x128xf32>
    %18 = math.exp %17 : vector<2x128xf32>
    %cst_14 = arith.constant 1.000000e+00 : f32
    %19 = vector.broadcast %cst_14 : f32 to vector<2x128xf32>
    %20 = arith.addf %19, %18 : vector<2x128xf32>
    %21 = arith.divf %19, %20 : vector<2x128xf32>
    %22 = vector.extract_strided_slice %15 {offsets = [0, 128], sizes = [2, 128], strides = [1, 1]} : vector<2x512xf32> to vector<2x128xf32>
    %23 = arith.negf %22 : vector<2x128xf32>
    %24 = math.exp %23 : vector<2x128xf32>
    %cst_15 = arith.constant 1.000000e+00 : f32
    %25 = vector.broadcast %cst_15 : f32 to vector<2x128xf32>
    %26 = arith.addf %25, %24 : vector<2x128xf32>
    %27 = arith.divf %25, %26 : vector<2x128xf32>
    %28 = vector.extract_strided_slice %15 {offsets = [0, 256], sizes = [2, 128], strides = [1, 1]} : vector<2x512xf32> to vector<2x128xf32>
    %29 = math.tanh %28 : vector<2x128xf32>
    %30 = vector.extract_strided_slice %15 {offsets = [0, 384], sizes = [2, 128], strides = [1, 1]} : vector<2x512xf32> to vector<2x128xf32>
    %31 = arith.negf %30 : vector<2x128xf32>
    %32 = math.exp %31 : vector<2x128xf32>
    %cst_16 = arith.constant 1.000000e+00 : f32
    %33 = vector.broadcast %cst_16 : f32 to vector<2x128xf32>
    %34 = arith.addf %33, %32 : vector<2x128xf32>
    %35 = arith.divf %33, %34 : vector<2x128xf32>
    %36 = arith.mulf %27, %9 : vector<2x128xf32>
    %37 = arith.mulf %21, %29 : vector<2x128xf32>
    %38 = arith.addf %36, %37 : vector<2x128xf32>
    %39 = math.tanh %38 : vector<2x128xf32>
    %40 = arith.mulf %35, %39 : vector<2x128xf32>
    %c1 = arith.constant 1 : index
    %c0_17 = arith.constant 0 : index
    %c0_18 = arith.constant 0 : index
    %41 = vector.load %arg2[%c1, %c0_17, %c0_18] : memref<8x2x5xf32, #tpu.memory_space<vmem>>, vector<1x2x5xf32>
    %42 = vector.shape_cast %41 : vector<1x2x5xf32> to vector<2x5xf32>
    %cst_19 = arith.constant dense<0.000000e+00> : vector<2x512xf32>
    %43 = tpu.matmul %42, %3, %cst_19 {dimension_numbers = #tpu.dot_dimension_numbers<[1], [0], [0], [1], [0, 0, 1, 1], [], []>} : vector<2x5xf32>, vector<5x512xf32>, vector<2x512xf32> -> vector<2x512xf32>
    %44 = arith.addf %43, %7 : vector<2x512xf32>
    %cst_20 = arith.constant dense<0.000000e+00> : vector<2x512xf32>
    %45 = tpu.matmul %40, %4, %cst_20 {dimension_numbers = #tpu.dot_dimension_numbers<[1], [0], [0], [1], [0, 0, 1, 1], [], []>} : vector<2x128xf32>, vector<128x512xf32>, vector<2x512xf32> -> vector<2x512xf32>
    %46 = arith.addf %44, %45 : vector<2x512xf32>
    %47 = vector.extract_strided_slice %46 {offsets = [0, 0], sizes = [2, 128], strides = [1, 1]} : vector<2x512xf32> to vector<2x128xf32>
    %48 = arith.negf %47 : vector<2x128xf32>
    %49 = math.exp %48 : vector<2x128xf32>
    %cst_21 = arith.constant 1.000000e+00 : f32
    %50 = vector.broadcast %cst_21 : f32 to vector<2x128xf32>
    %51 = arith.addf %50, %49 : vector<2x128xf32>
    %52 = arith.divf %50, %51 : vector<2x128xf32>
    %53 = vector.extract_strided_slice %46 {offsets = [0, 128], sizes = [2, 128], strides = [1, 1]} : vector<2x512xf32> to vector<2x128xf32>
    %54 = arith.negf %53 : vector<2x128xf32>
    %55 = math.exp %54 : vector<2x128xf32>
    %cst_22 = arith.constant 1.000000e+00 : f32
    %56 = vector.broadcast %cst_22 : f32 to vector<2x128xf32>
    %57 = arith.addf %56, %55 : vector<2x128xf32>
    %58 = arith.divf %56, %57 : vector<2x128xf32>
    %59 = vector.extract_strided_slice %46 {offsets = [0, 256], sizes = [2, 128], strides = [1, 1]} : vector<2x512xf32> to vector<2x128xf32>
    %60 = math.tanh %59 : vector<2x128xf32>
    %61 = vector.extract_strided_slice %46 {offsets = [0, 384], sizes = [2, 128], strides = [1, 1]} : vector<2x512xf32> to vector<2x128xf32>
    %62 = arith.negf %61 : vector<2x128xf32>
    %63 = math.exp %62 : vector<2x128xf32>
    %cst_23 = arith.constant 1.000000e+00 : f32
    %64 = vector.broadcast %cst_23 : f32 to vector<2x128xf32>
    %65 = arith.addf %64, %63 : vector<2x128xf32>
    %66 = arith.divf %64, %65 : vector<2x128xf32>
    %67 = arith.mulf %58, %38 : vector<2x128xf32>
    %68 = arith.mulf %52, %60 : vector<2x128xf32>
    %69 = arith.addf %67, %68 : vector<2x128xf32>
    %70 = math.tanh %69 : vector<2x128xf32>
    %71 = arith.mulf %66, %70 : vector<2x128xf32>
    %c2 = arith.constant 2 : index
    %c0_24 = arith.constant 0 : index
    %c0_25 = arith.constant 0 : index
    %72 = vector.load %arg2[%c2, %c0_24, %c0_25] : memref<8x2x5xf32, #tpu.memory_space<vmem>>, vector<1x2x5xf32>
    %73 = vector.shape_cast %72 : vector<1x2x5xf32> to vector<2x5xf32>
    %cst_26 = arith.constant dense<0.000000e+00> : vector<2x512xf32>
    %74 = tpu.matmul %73, %3, %cst_26 {dimension_numbers = #tpu.dot_dimension_numbers<[1], [0], [0], [1], [0, 0, 1, 1], [], []>} : vector<2x5xf32>, vector<5x512xf32>, vector<2x512xf32> -> vector<2x512xf32>
    %75 = arith.addf %74, %7 : vector<2x512xf32>
    %cst_27 = arith.constant dense<0.000000e+00> : vector<2x512xf32>
    %76 = tpu.matmul %71, %4, %cst_27 {dimension_numbers = #tpu.dot_dimension_numbers<[1], [0], [0], [1], [0, 0, 1, 1], [], []>} : vector<2x128xf32>, vector<128x512xf32>, vector<2x512xf32> -> vector<2x512xf32>
    %77 = arith.addf %75, %76 : vector<2x512xf32>
    %78 = vector.extract_strided_slice %77 {offsets = [0, 0], sizes = [2, 128], strides = [1, 1]} : vector<2x512xf32> to vector<2x128xf32>
    %79 = arith.negf %78 : vector<2x128xf32>
    %80 = math.exp %79 : vector<2x128xf32>
    %cst_28 = arith.constant 1.000000e+00 : f32
    %81 = vector.broadcast %cst_28 : f32 to vector<2x128xf32>
    %82 = arith.addf %81, %80 : vector<2x128xf32>
    %83 = arith.divf %81, %82 : vector<2x128xf32>
    %84 = vector.extract_strided_slice %77 {offsets = [0, 128], sizes = [2, 128], strides = [1, 1]} : vector<2x512xf32> to vector<2x128xf32>
    %85 = arith.negf %84 : vector<2x128xf32>
    %86 = math.exp %85 : vector<2x128xf32>
    %cst_29 = arith.constant 1.000000e+00 : f32
    %87 = vector.broadcast %cst_29 : f32 to vector<2x128xf32>
    %88 = arith.addf %87, %86 : vector<2x128xf32>
    %89 = arith.divf %87, %88 : vector<2x128xf32>
    %90 = vector.extract_strided_slice %77 {offsets = [0, 256], sizes = [2, 128], strides = [1, 1]} : vector<2x512xf32> to vector<2x128xf32>
    %91 = math.tanh %90 : vector<2x128xf32>
    %92 = vector.extract_strided_slice %77 {offsets = [0, 384], sizes = [2, 128], strides = [1, 1]} : vector<2x512xf32> to vector<2x128xf32>
    %93 = arith.negf %92 : vector<2x128xf32>
    %94 = math.exp %93 : vector<2x128xf32>
    %cst_30 = arith.constant 1.000000e+00 : f32
    %95 = vector.broadcast %cst_30 : f32 to vector<2x128xf32>
    %96 = arith.addf %95, %94 : vector<2x128xf32>
    %97 = arith.divf %95, %96 : vector<2x128xf32>
    %98 = arith.mulf %89, %69 : vector<2x128xf32>
    %99 = arith.mulf %83, %91 : vector<2x128xf32>
    %100 = arith.addf %98, %99 : vector<2x128xf32>
    %101 = math.tanh %100 : vector<2x128xf32>
    %102 = arith.mulf %97, %101 : vector<2x128xf32>
    %c3 = arith.constant 3 : index
    %c0_31 = arith.constant 0 : index
    %c0_32 = arith.constant 0 : index
    %103 = vector.load %arg2[%c3, %c0_31, %c0_32] : memref<8x2x5xf32, #tpu.memory_space<vmem>>, vector<1x2x5xf32>
    %104 = vector.shape_cast %103 : vector<1x2x5xf32> to vector<2x5xf32>
    %cst_33 = arith.constant dense<0.000000e+00> : vector<2x512xf32>
    %105 = tpu.matmul %104, %3, %cst_33 {dimension_numbers = #tpu.dot_dimension_numbers<[1], [0], [0], [1], [0, 0, 1, 1], [], []>} : vector<2x5xf32>, vector<5x512xf32>, vector<2x512xf32> -> vector<2x512xf32>
    %106 = arith.addf %105, %7 : vector<2x512xf32>
    %cst_34 = arith.constant dense<0.000000e+00> : vector<2x512xf32>
    %107 = tpu.matmul %102, %4, %cst_34 {dimension_numbers = #tpu.dot_dimension_numbers<[1], [0], [0], [1], [0, 0, 1, 1], [], []>} : vector<2x128xf32>, vector<128x512xf32>, vector<2x512xf32> -> vector<2x512xf32>
    %108 = arith.addf %106, %107 : vector<2x512xf32>
    %109 = vector.extract_strided_slice %108 {offsets = [0, 0], sizes = [2, 128], strides = [1, 1]} : vector<2x512xf32> to vector<2x128xf32>
    %110 = arith.negf %109 : vector<2x128xf32>
    %111 = math.exp %110 : vector<2x128xf32>
    %cst_35 = arith.constant 1.000000e+00 : f32
    %112 = vector.broadcast %cst_35 : f32 to vector<2x128xf32>
    %113 = arith.addf %112, %111 : vector<2x128xf32>
    %114 = arith.divf %112, %113 : vector<2x128xf32>
    %115 = vector.extract_strided_slice %108 {offsets = [0, 128], sizes = [2, 128], strides = [1, 1]} : vector<2x512xf32> to vector<2x128xf32>
    %116 = arith.negf %115 : vector<2x128xf32>
    %117 = math.exp %116 : vector<2x128xf32>
    %cst_36 = arith.constant 1.000000e+00 : f32
    %118 = vector.broadcast %cst_36 : f32 to vector<2x128xf32>
    %119 = arith.addf %118, %117 : vector<2x128xf32>
    %120 = arith.divf %118, %119 : vector<2x128xf32>
    %121 = vector.extract_strided_slice %108 {offsets = [0, 256], sizes = [2, 128], strides = [1, 1]} : vector<2x512xf32> to vector<2x128xf32>
    %122 = math.tanh %121 : vector<2x128xf32>
    %123 = vector.extract_strided_slice %108 {offsets = [0, 384], sizes = [2, 128], strides = [1, 1]} : vector<2x512xf32> to vector<2x128xf32>
    %124 = arith.negf %123 : vector<2x128xf32>
    %125 = math.exp %124 : vector<2x128xf32>
    %cst_37 = arith.constant 1.000000e+00 : f32
    %126 = vector.broadcast %cst_37 : f32 to vector<2x128xf32>
    %127 = arith.addf %126, %125 : vector<2x128xf32>
    %128 = arith.divf %126, %127 : vector<2x128xf32>
    %129 = arith.mulf %120, %100 : vector<2x128xf32>
    %130 = arith.mulf %114, %122 : vector<2x128xf32>
    %131 = arith.addf %129, %130 : vector<2x128xf32>
    %132 = math.tanh %131 : vector<2x128xf32>
    %133 = arith.mulf %128, %132 : vector<2x128xf32>
    %c4 = arith.constant 4 : index
    %c0_38 = arith.constant 0 : index
    %c0_39 = arith.constant 0 : index
    %134 = vector.load %arg2[%c4, %c0_38, %c0_39] : memref<8x2x5xf32, #tpu.memory_space<vmem>>, vector<1x2x5xf32>
    %135 = vector.shape_cast %134 : vector<1x2x5xf32> to vector<2x5xf32>
    %cst_40 = arith.constant dense<0.000000e+00> : vector<2x512xf32>
    %136 = tpu.matmul %135, %3, %cst_40 {dimension_numbers = #tpu.dot_dimension_numbers<[1], [0], [0], [1], [0, 0, 1, 1], [], []>} : vector<2x5xf32>, vector<5x512xf32>, vector<2x512xf32> -> vector<2x512xf32>
    %137 = arith.addf %136, %7 : vector<2x512xf32>
    %cst_41 = arith.constant dense<0.000000e+00> : vector<2x512xf32>
    %138 = tpu.matmul %133, %4, %cst_41 {dimension_numbers = #tpu.dot_dimension_numbers<[1], [0], [0], [1], [0, 0, 1, 1], [], []>} : vector<2x128xf32>, vector<128x512xf32>, vector<2x512xf32> -> vector<2x512xf32>
    %139 = arith.addf %137, %138 : vector<2x512xf32>
    %140 = vector.extract_strided_slice %139 {offsets = [0, 0], sizes = [2, 128], strides = [1, 1]} : vector<2x512xf32> to vector<2x128xf32>
    %141 = arith.negf %140 : vector<2x128xf32>
    %142 = math.exp %141 : vector<2x128xf32>
    %cst_42 = arith.constant 1.000000e+00 : f32
    %143 = vector.broadcast %cst_42 : f32 to vector<2x128xf32>
    %144 = arith.addf %143, %142 : vector<2x128xf32>
    %145 = arith.divf %143, %144 : vector<2x128xf32>
    %146 = vector.extract_strided_slice %139 {offsets = [0, 128], sizes = [2, 128], strides = [1, 1]} : vector<2x512xf32> to vector<2x128xf32>
    %147 = arith.negf %146 : vector<2x128xf32>
    %148 = math.exp %147 : vector<2x128xf32>
    %cst_43 = arith.constant 1.000000e+00 : f32
    %149 = vector.broadcast %cst_43 : f32 to vector<2x128xf32>
    %150 = arith.addf %149, %148 : vector<2x128xf32>
    %151 = arith.divf %149, %150 : vector<2x128xf32>
    %152 = vector.extract_strided_slice %139 {offsets = [0, 256], sizes = [2, 128], strides = [1, 1]} : vector<2x512xf32> to vector<2x128xf32>
    %153 = math.tanh %152 : vector<2x128xf32>
    %154 = vector.extract_strided_slice %139 {offsets = [0, 384], sizes = [2, 128], strides = [1, 1]} : vector<2x512xf32> to vector<2x128xf32>
    %155 = arith.negf %154 : vector<2x128xf32>
    %156 = math.exp %155 : vector<2x128xf32>
    %cst_44 = arith.constant 1.000000e+00 : f32
    %157 = vector.broadcast %cst_44 : f32 to vector<2x128xf32>
    %158 = arith.addf %157, %156 : vector<2x128xf32>
    %159 = arith.divf %157, %158 : vector<2x128xf32>
    %160 = arith.mulf %151, %131 : vector<2x128xf32>
    %161 = arith.mulf %145, %153 : vector<2x128xf32>
    %162 = arith.addf %160, %161 : vector<2x128xf32>
    %163 = math.tanh %162 : vector<2x128xf32>
    %164 = arith.mulf %159, %163 : vector<2x128xf32>
    %c5 = arith.constant 5 : index
    %c0_45 = arith.constant 0 : index
    %c0_46 = arith.constant 0 : index
    %165 = vector.load %arg2[%c5, %c0_45, %c0_46] : memref<8x2x5xf32, #tpu.memory_space<vmem>>, vector<1x2x5xf32>
    %166 = vector.shape_cast %165 : vector<1x2x5xf32> to vector<2x5xf32>
    %cst_47 = arith.constant dense<0.000000e+00> : vector<2x512xf32>
    %167 = tpu.matmul %166, %3, %cst_47 {dimension_numbers = #tpu.dot_dimension_numbers<[1], [0], [0], [1], [0, 0, 1, 1], [], []>} : vector<2x5xf32>, vector<5x512xf32>, vector<2x512xf32> -> vector<2x512xf32>
    %168 = arith.addf %167, %7 : vector<2x512xf32>
    %cst_48 = arith.constant dense<0.000000e+00> : vector<2x512xf32>
    %169 = tpu.matmul %164, %4, %cst_48 {dimension_numbers = #tpu.dot_dimension_numbers<[1], [0], [0], [1], [0, 0, 1, 1], [], []>} : vector<2x128xf32>, vector<128x512xf32>, vector<2x512xf32> -> vector<2x512xf32>
    %170 = arith.addf %168, %169 : vector<2x512xf32>
    %171 = vector.extract_strided_slice %170 {offsets = [0, 0], sizes = [2, 128], strides = [1, 1]} : vector<2x512xf32> to vector<2x128xf32>
    %172 = arith.negf %171 : vector<2x128xf32>
    %173 = math.exp %172 : vector<2x128xf32>
    %cst_49 = arith.constant 1.000000e+00 : f32
    %174 = vector.broadcast %cst_49 : f32 to vector<2x128xf32>
    %175 = arith.addf %174, %173 : vector<2x128xf32>
    %176 = arith.divf %174, %175 : vector<2x128xf32>
    %177 = vector.extract_strided_slice %170 {offsets = [0, 128], sizes = [2, 128], strides = [1, 1]} : vector<2x512xf32> to vector<2x128xf32>
    %178 = arith.negf %177 : vector<2x128xf32>
    %179 = math.exp %178 : vector<2x128xf32>
    %cst_50 = arith.constant 1.000000e+00 : f32
    %180 = vector.broadcast %cst_50 : f32 to vector<2x128xf32>
    %181 = arith.addf %180, %179 : vector<2x128xf32>
    %182 = arith.divf %180, %181 : vector<2x128xf32>
    %183 = vector.extract_strided_slice %170 {offsets = [0, 256], sizes = [2, 128], strides = [1, 1]} : vector<2x512xf32> to vector<2x128xf32>
    %184 = math.tanh %183 : vector<2x128xf32>
    %185 = vector.extract_strided_slice %170 {offsets = [0, 384], sizes = [2, 128], strides = [1, 1]} : vector<2x512xf32> to vector<2x128xf32>
    %186 = arith.negf %185 : vector<2x128xf32>
    %187 = math.exp %186 : vector<2x128xf32>
    %cst_51 = arith.constant 1.000000e+00 : f32
    %188 = vector.broadcast %cst_51 : f32 to vector<2x128xf32>
    %189 = arith.addf %188, %187 : vector<2x128xf32>
    %190 = arith.divf %188, %189 : vector<2x128xf32>
    %191 = arith.mulf %182, %162 : vector<2x128xf32>
    %192 = arith.mulf %176, %184 : vector<2x128xf32>
    %193 = arith.addf %191, %192 : vector<2x128xf32>
    %194 = math.tanh %193 : vector<2x128xf32>
    %195 = arith.mulf %190, %194 : vector<2x128xf32>
    %c6 = arith.constant 6 : index
    %c0_52 = arith.constant 0 : index
    %c0_53 = arith.constant 0 : index
    %196 = vector.load %arg2[%c6, %c0_52, %c0_53] : memref<8x2x5xf32, #tpu.memory_space<vmem>>, vector<1x2x5xf32>
    %197 = vector.shape_cast %196 : vector<1x2x5xf32> to vector<2x5xf32>
    %cst_54 = arith.constant dense<0.000000e+00> : vector<2x512xf32>
    %198 = tpu.matmul %197, %3, %cst_54 {dimension_numbers = #tpu.dot_dimension_numbers<[1], [0], [0], [1], [0, 0, 1, 1], [], []>} : vector<2x5xf32>, vector<5x512xf32>, vector<2x512xf32> -> vector<2x512xf32>
    %199 = arith.addf %198, %7 : vector<2x512xf32>
    %cst_55 = arith.constant dense<0.000000e+00> : vector<2x512xf32>
    %200 = tpu.matmul %195, %4, %cst_55 {dimension_numbers = #tpu.dot_dimension_numbers<[1], [0], [0], [1], [0, 0, 1, 1], [], []>} : vector<2x128xf32>, vector<128x512xf32>, vector<2x512xf32> -> vector<2x512xf32>
    %201 = arith.addf %199, %200 : vector<2x512xf32>
    %202 = vector.extract_strided_slice %201 {offsets = [0, 0], sizes = [2, 128], strides = [1, 1]} : vector<2x512xf32> to vector<2x128xf32>
    %203 = arith.negf %202 : vector<2x128xf32>
    %204 = math.exp %203 : vector<2x128xf32>
    %cst_56 = arith.constant 1.000000e+00 : f32
    %205 = vector.broadcast %cst_56 : f32 to vector<2x128xf32>
    %206 = arith.addf %205, %204 : vector<2x128xf32>
    %207 = arith.divf %205, %206 : vector<2x128xf32>
    %208 = vector.extract_strided_slice %201 {offsets = [0, 128], sizes = [2, 128], strides = [1, 1]} : vector<2x512xf32> to vector<2x128xf32>
    %209 = arith.negf %208 : vector<2x128xf32>
    %210 = math.exp %209 : vector<2x128xf32>
    %cst_57 = arith.constant 1.000000e+00 : f32
    %211 = vector.broadcast %cst_57 : f32 to vector<2x128xf32>
    %212 = arith.addf %211, %210 : vector<2x128xf32>
    %213 = arith.divf %211, %212 : vector<2x128xf32>
    %214 = vector.extract_strided_slice %201 {offsets = [0, 256], sizes = [2, 128], strides = [1, 1]} : vector<2x512xf32> to vector<2x128xf32>
    %215 = math.tanh %214 : vector<2x128xf32>
    %216 = vector.extract_strided_slice %201 {offsets = [0, 384], sizes = [2, 128], strides = [1, 1]} : vector<2x512xf32> to vector<2x128xf32>
    %217 = arith.negf %216 : vector<2x128xf32>
    %218 = math.exp %217 : vector<2x128xf32>
    %cst_58 = arith.constant 1.000000e+00 : f32
    %219 = vector.broadcast %cst_58 : f32 to vector<2x128xf32>
    %220 = arith.addf %219, %218 : vector<2x128xf32>
    %221 = arith.divf %219, %220 : vector<2x128xf32>
    %222 = arith.mulf %213, %193 : vector<2x128xf32>
    %223 = arith.mulf %207, %215 : vector<2x128xf32>
    %224 = arith.addf %222, %223 : vector<2x128xf32>
    %225 = math.tanh %224 : vector<2x128xf32>
    %226 = arith.mulf %221, %225 : vector<2x128xf32>
    %c7 = arith.constant 7 : index
    %c0_59 = arith.constant 0 : index
    %c0_60 = arith.constant 0 : index
    %227 = vector.load %arg2[%c7, %c0_59, %c0_60] : memref<8x2x5xf32, #tpu.memory_space<vmem>>, vector<1x2x5xf32>
    %228 = vector.shape_cast %227 : vector<1x2x5xf32> to vector<2x5xf32>
    %cst_61 = arith.constant dense<0.000000e+00> : vector<2x512xf32>
    %229 = tpu.matmul %228, %3, %cst_61 {dimension_numbers = #tpu.dot_dimension_numbers<[1], [0], [0], [1], [0, 0, 1, 1], [], []>} : vector<2x5xf32>, vector<5x512xf32>, vector<2x512xf32> -> vector<2x512xf32>
    %230 = arith.addf %229, %7 : vector<2x512xf32>
    %cst_62 = arith.constant dense<0.000000e+00> : vector<2x512xf32>
    %231 = tpu.matmul %226, %4, %cst_62 {dimension_numbers = #tpu.dot_dimension_numbers<[1], [0], [0], [1], [0, 0, 1, 1], [], []>} : vector<2x128xf32>, vector<128x512xf32>, vector<2x512xf32> -> vector<2x512xf32>
    %232 = arith.addf %230, %231 : vector<2x512xf32>
    %233 = vector.extract_strided_slice %232 {offsets = [0, 0], sizes = [2, 128], strides = [1, 1]} : vector<2x512xf32> to vector<2x128xf32>
    %234 = arith.negf %233 : vector<2x128xf32>
    %235 = math.exp %234 : vector<2x128xf32>
    %cst_63 = arith.constant 1.000000e+00 : f32
    %236 = vector.broadcast %cst_63 : f32 to vector<2x128xf32>
    %237 = arith.addf %236, %235 : vector<2x128xf32>
    %238 = arith.divf %236, %237 : vector<2x128xf32>
    %239 = vector.extract_strided_slice %232 {offsets = [0, 128], sizes = [2, 128], strides = [1, 1]} : vector<2x512xf32> to vector<2x128xf32>
    %240 = arith.negf %239 : vector<2x128xf32>
    %241 = math.exp %240 : vector<2x128xf32>
    %cst_64 = arith.constant 1.000000e+00 : f32
    %242 = vector.broadcast %cst_64 : f32 to vector<2x128xf32>
    %243 = arith.addf %242, %241 : vector<2x128xf32>
    %244 = arith.divf %242, %243 : vector<2x128xf32>
    %245 = vector.extract_strided_slice %232 {offsets = [0, 256], sizes = [2, 128], strides = [1, 1]} : vector<2x512xf32> to vector<2x128xf32>
    %246 = math.tanh %245 : vector<2x128xf32>
    %247 = vector.extract_strided_slice %232 {offsets = [0, 384], sizes = [2, 128], strides = [1, 1]} : vector<2x512xf32> to vector<2x128xf32>
    %248 = arith.negf %247 : vector<2x128xf32>
    %249 = math.exp %248 : vector<2x128xf32>
    %cst_65 = arith.constant 1.000000e+00 : f32
    %250 = vector.broadcast %cst_65 : f32 to vector<2x128xf32>
    %251 = arith.addf %250, %249 : vector<2x128xf32>
    %252 = arith.divf %250, %251 : vector<2x128xf32>
    %253 = arith.mulf %244, %224 : vector<2x128xf32>
    %254 = arith.mulf %238, %246 : vector<2x128xf32>
    %255 = arith.addf %253, %254 : vector<2x128xf32>
    %256 = math.tanh %255 : vector<2x128xf32>
    %257 = arith.mulf %252, %256 : vector<2x128xf32>
    %c0_66 = arith.constant 0 : index
    %c0_67 = arith.constant 0 : index
    %258 = vector.load %arg7[%c0_66, %c0_67] : memref<2x128xf32, #tpu.memory_space<vmem>>, vector<2x128xf32>
    tpu.vector_store %arg7[%c0_66, %c0_67], %257 {strides = array<i32>} : memref<2x128xf32, #tpu.memory_space<vmem>>, vector<2x128xf32>,
    %c0_68 = arith.constant 0 : index
    %c0_69 = arith.constant 0 : index
    %259 = vector.load %arg8[%c0_68, %c0_69] : memref<2x128xf32, #tpu.memory_space<vmem>>, vector<2x128xf32>
    tpu.vector_store %arg8[%c0_68, %c0_69], %255 {strides = array<i32>} : memref<2x128xf32, #tpu.memory_space<vmem>>, vector<2x128xf32>,
    %c0_i32_70 = arith.constant 0 : i32
    %260 = arith.cmpi eq, %arg1, %c0_i32_70 : i32
    %261 = arith.extui %260 : i1 to i32
    %c0_i32_71 = arith.constant 0 : i32
    %262 = arith.cmpi ne, %261, %c0_i32_71 : i32
    scf.if %262 {
      %c0_72 = arith.constant 0 : index
      %c0_73 = arith.constant 0 : index
      %263 = vector.load %arg6[%c0_72, %c0_73] : memref<2x128xf32, #tpu.memory_space<vmem>>, vector<2x128xf32>
      tpu.vector_store %arg6[%c0_72, %c0_73], %257 {strides = array<i32>} : memref<2x128xf32, #tpu.memory_space<vmem>>, vector<2x128xf32>,
    } else {
    }
    return
  }
  func.func @transform_0(%arg0: i32, %arg1: i32) -> (i32, i32, i32) {
    %c0_i32 = arith.constant 0 : i32
    %c0_i32_0 = arith.constant 0 : i32
    return %arg1, %arg0, %c0_i32 : i32, i32, i32
  }
  func.func @transform_1(%arg0: i32, %arg1: i32) -> (i32, i32) {
    %c0_i32 = arith.constant 0 : i32
    %c0_i32_0 = arith.constant 0 : i32
    %c0_i32_1 = arith.constant 0 : i32
    return %c0_i32, %c0_i32_0 : i32, i32
  }
  func.func @transform_2(%arg0: i32, %arg1: i32) -> (i32, i32) {
    %c0_i32 = arith.constant 0 : i32
    %c0_i32_0 = arith.constant 0 : i32
    %c0_i32_1 = arith.constant 0 : i32
    return %c0_i32, %c0_i32_0 : i32, i32
  }
  func.func @transform_3(%arg0: i32, %arg1: i32) -> (i32, i32) {
    %c0_i32 = arith.constant 0 : i32
    %c0_i32_0 = arith.constant 0 : i32
    %c0_i32_1 = arith.constant 0 : i32
    return %c0_i32, %c0_i32_0 : i32, i32
  }
  func.func @transform_4(%arg0: i32, %arg1: i32) -> (i32, i32) {
    %c0_i32 = arith.constant 0 : i32
    %c0_i32_0 = arith.constant 0 : i32
    return %arg0, %c0_i32 : i32, i32
  }
}

</mosaic_0001>

<bundles_post_ra>
// kernel: cpg_predictor_forward.1
= control target key start
LH: loop header
LB: loop body
LE: loop exit
PB: predicated region body
PF: predicated region fallthrough
CT: control target
= control target key end

     0   :  { %vm120_vm0 = vcmask 1044480   ;;  %vm116_vm1 = vcmask 39936   ;;  %v3462_v3 = vmov 0.0   ;;  %s4248_s1 = inlined_call_operand.vmem [shape: f32[5,512], index: 1, kind: input, shape index: {}]   ;;  %s4249_s2 = inlined_call_operand.vmem [shape: f32[128,512], index: 2, kind: input, shape index: {}]   ;;  %s4250_s0 = inlined_call_operand.vmem [shape: f32[8,2,5], index: 0, kind: input, shape index: {}]   ;;  %s4251_s3 = inlined_call_operand.vmem [shape: f32[1,512], index: 3, kind: input, shape index: {}]   ;;  %s4252_s4 = inlined_call_operand.vmem [shape: f32[2,128], index: 4, kind: output, shape index: {}]  }
   0x1   :  { %v3491_v0 = vld [vmem:[%s4248_s1 + $0x8] sm:$0x1f]  ;;  %v3496_v1 = vld [vmem:[%s4248_s1 + $0x18] sm:$0x1f]  ;;  %v3501_v2 = vld [vmem:[%s4248_s1] sm:$0x1f]  ;;  %197 = vmatprep.mubr.f32.mxu0 %v3462_v3  ;;  %268 = vmatprep.mubr.f32.mxu1 %v3462_v3 }
   0x2   :  { %21 = vst [vmem:[#allocation2] sm:$0x3] %v3462_v3  ;;  %22 = vst [vmem:[#allocation3] sm:$0x3] %v3462_v3  ;;  %2674 = vmatprep.subr.msk.mxu0 %vm120_vm0, %v3491_v0  ;;  %2677 = vmatprep.subr.msk.mxu1 %vm120_vm0, %v3496_v1  ;;  %v3514_v4 = vld [vmem:[%s4248_s1 + $0x10] sm:$0x1f] }
   0x3   :  { %v28_v5 = vld [vmem:[%s4249_s2 + $0x8] sm:$0xff]  ;;  %2675 = vmatpush1.msk.msra.mxu0 %vm120_vm0, %v3501_v2  ;;  %2678 = vmatpush1.msk.msra.mxu1 %vm120_vm0, %v3514_v4  ;;  %v30_v8 = vld [vmem:[%s4249_s2 + $0x18] sm:$0xff]  ;;  %v115_v10 = vld [vmem:[%s4250_s0] sm:$0x3] }
   0x4   :  { %v32_v6 = vld [vmem:[%s4249_s2 + $0x28] sm:$0xff]  ;;  %v34_v9 = vld [vmem:[%s4249_s2 + $0x38] sm:$0xff]  ;;  %2676 = vmatmul.mubr.msk.f32.vlgmr.msra.gmra.mrb[0].mxu0 %vm116_vm1, %v115_v10  ;;  %2679 = vmatmul.mubr.msk.f32.vlgmr.msra.gmra.mrb[0].mxu1 %vm116_vm1, %v115_v10  ;;  %v27_v12 = vld [vmem:[%s4249_s2] sm:$0xff] }
   0x5   :  { %v3526_v7 = vpack.c.bf16 %v32_v6, %v28_v5  ;;  %v3537_v11 = vpack.c.bf16 %v34_v9, %v30_v8  ;;  %v31_v13 = vld [vmem:[%s4249_s2 + $0x20] sm:$0xff]  ;;  %v29_v14 = vld [vmem:[%s4249_s2 + $0x10] sm:$0xff]  ;;  %v36_v17 = vld [vmem:[%s4249_s2 + $0x48] sm:$0xff]  ;;  %339 = vmatprep.mubr.f32.mxu0 %v3462_v3  ;;  %410 = vmatprep.mubr.f32.mxu1 %v3462_v3 }
   0x6   :  { %v3551_v15 = vpack.c.bf16 %v31_v13, %v27_v12  ;;  %v33_v16 = vld [vmem:[%s4249_s2 + $0x30] sm:$0xff]  ;;  %v40_v18 = vld [vmem:[%s4249_s2 + $0x68] sm:$0xff]  ;;  %v38_v21 = vld [vmem:[%s4249_s2 + $0x58] sm:$0xff] }
   0x7   :  { %2754 = vmatprep.subr.bf16.mxu0 %v3526_v7  ;;  %2786 = vmatprep.subr.bf16.mxu1 %v3537_v11  ;;  %v3564_v19 = vpack.c.bf16 %v33_v16, %v29_v14  ;;  %v3566_v20 = vpack.c.bf16 %v40_v18, %v36_v17  ;;  %v42_v22 = vld [vmem:[%s4249_s2 + $0x78] sm:$0xff]  ;;  %v35_v23 = vld [vmem:[%s4249_s2 + $0x40] sm:$0xff]  ;;  %v37_v26 = vld [vmem:[%s4249_s2 + $0x50] sm:$0xff] }
   0x8   :  { %2756 = vmatpush1.bf16.msra.mxu0 %v3551_v15  ;;  %v3579_v24 = vpack.c.bf16 %v42_v22, %v38_v21  ;;  %v39_v25 = vld [vmem:[%s4249_s2 + $0x60] sm:$0xff]  ;;  %v41_v27 = vld [vmem:[%s4249_s2 + $0x70] sm:$0xff]  ;;  %v44_v30 = vld [vmem:[%s4249_s2 + $0x88] sm:$0xff] }
   0x9   :  { %2788 = vmatpush1.bf16.msra.mxu1 %v3564_v19  ;;  %2758 = vmatprep.subr.bf16.mxu0 %v3566_v20  ;;  %v3592_v28 = vpack.c.bf16 %v39_v25, %v35_v23  ;;  %v3594_v29 = vpack.c.bf16 %v41_v27, %v37_v26  ;;  %v48_v31 = vld [vmem:[%s4249_s2 + $0xa8] sm:$0xff]  ;;  %v46_v32 = vld [vmem:[%s4249_s2 + $0x98] sm:$0xff]  ;;  %v43_v35 = vld [vmem:[%s4249_s2 + $0x80] sm:$0xff] }
   0xa   :  { %2790 = vmatprep.subr.bf16.mxu1 %v3579_v24  ;;  %v3606_v33 = vpack.c.bf16 %v48_v31, %v44_v30  ;;  %v50_v34 = vld [vmem:[%s4249_s2 + $0xb8] sm:$0xff]  ;;  %v47_v36 = vld [vmem:[%s4249_s2 + $0xa0] sm:$0xff]  ;;  %v45_v38 = vld [vmem:[%s4249_s2 + $0x90] sm:$0xff] }
   0xb   :  { %v3617_v37 = vpack.c.bf16 %v50_v34, %v46_v32  ;;  %v49_v39 = vld [vmem:[%s4249_s2 + $0xb0] sm:$0xff]  ;;  %v52_v40 = vld [vmem:[%s4249_s2 + $0xc8] sm:$0xff]  ;;  %v3629_v41 = vpack.c.bf16 %v47_v36, %v43_v35  ;;  %v54_v43 = vld [vmem:[%s4249_s2 + $0xd8] sm:$0xff] }
   0xc   :  { %2760 = vmatpush1.bf16.msra.mxu0 %v3592_v28  ;;  %v56_v42 = vld [vmem:[%s4249_s2 + $0xe8] sm:$0xff]  ;;  %v58_v44 = vld [vmem:[%s4249_s2 + $0xf8] sm:$0xff]  ;;  %v3642_v45 = vpack.c.bf16 %v49_v39, %v45_v38  ;;  %v51_v47 = vld [vmem:[%s4249_s2 + $0xc0] sm:$0xff] }
   0xd   :  { %2792 = vmatpush1.bf16.msra.mxu1 %v3594_v29  ;;  %2762 = vmatprep.subr.bf16.mxu0 %v3606_v33  ;;  %v3644_v46 = vpack.c.bf16 %v56_v42, %v52_v40  ;;  %v55_v48 = vld [vmem:[%s4249_s2 + $0xe0] sm:$0xff]  ;;  %v53_v49 = vld [vmem:[%s4249_s2 + $0xd0] sm:$0xff]  ;;  %v3656_v50 = vpack.c.bf16 %v58_v44, %v54_v43  ;;  %v60_v52 = vld [vmem:[%s4249_s2 + $0x108] sm:$0xff] }
   0xe   :  { %2794 = vmatprep.subr.bf16.mxu1 %v3617_v37  ;;  %v57_v51 = vld [vmem:[%s4249_s2 + $0xf0] sm:$0xff]  ;;  %v64_v53 = vld [vmem:[%s4249_s2 + $0x128] sm:$0xff]  ;;  %v62_v54 = vld [vmem:[%s4249_s2 + $0x118] sm:$0xff]  ;;  %v3674_v56 = vpack.c.bf16 %v55_v48, %v51_v47 }
   0xf   :  { %v66_v55 = vld [vmem:[%s4249_s2 + $0x138] sm:$0xff]  ;;  %v3678_v57 = vpack.c.bf16 %v57_v51, %v53_v49  ;;  %v3680_v58 = vpack.c.bf16 %v64_v53, %v60_v52  ;;  %v59_v59 = vld [vmem:[%s4249_s2 + $0x100] sm:$0xff]  ;;  %v61_v61 = vld [vmem:[%s4249_s2 + $0x110] sm:$0xff] }
  0x10   :  { %2764 = vmatpush1.bf16.msra.mxu0 %v3629_v41  ;;  %v63_v60 = vld [vmem:[%s4249_s2 + $0x120] sm:$0xff]  ;;  %v3692_v62 = vpack.c.bf16 %v66_v55, %v62_v54  ;;  %v65_v63 = vld [vmem:[%s4249_s2 + $0x130] sm:$0xff]  ;;  %v68_v5 = vld [vmem:[%s4249_s2 + $0x148] sm:$0xff] }
  0x11   :  { %2796 = vmatpush1.bf16.msra.mxu1 %v3642_v45  ;;  %2766 = vmatprep.subr.bf16.mxu0 %v3644_v46  ;;  %v72_v6 = vld [vmem:[%s4249_s2 + $0x168] sm:$0xff]  ;;  %v70_v8 = vld [vmem:[%s4249_s2 + $0x158] sm:$0xff]  ;;  %v3710_v10 = vpack.c.bf16 %v63_v60, %v59_v59  ;;  %v3714_v12 = vpack.c.bf16 %v65_v63, %v61_v61  ;;  %v67_v14 = vld [vmem:[%s4249_s2 + $0x140] sm:$0xff]  ;;  %v93_v63 = vlaneseq }
  0x12   :  { %2798 = vmatprep.subr.bf16.mxu1 %v3656_v50  ;;  %v74_v9 = vld [vmem:[%s4249_s2 + $0x178] sm:$0xff]  ;;  %v3716_v13 = vpack.c.bf16 %v72_v6, %v68_v5  ;;  %v71_v16 = vld [vmem:[%s4249_s2 + $0x160] sm:$0xff]  ;;  %v69_v17 = vld [vmem:[%s4249_s2 + $0x150] sm:$0xff] }
  0x13   :  { %v3728_v18 = vpack.c.bf16 %v74_v9, %v70_v8  ;;  %v73_v21 = vld [vmem:[%s4249_s2 + $0x170] sm:$0xff]  ;;  %v76_v22 = vld [vmem:[%s4249_s2 + $0x188] sm:$0xff]  ;;  %v78_v25 = vld [vmem:[%s4249_s2 + $0x198] sm:$0xff]  ;;  %v3746_v27 = vpack.c.bf16 %v71_v16, %v67_v14  ;;  %v94_v5 = vshrl.u32 %v93_v63, 7 }
  0x14   :  { %2768 = vmatpush1.bf16.msra.mxu0 %v3674_v56  ;;  %v80_v23 = vld [vmem:[%s4249_s2 + $0x1a8] sm:$0xff]  ;;  %v82_v26 = vld [vmem:[%s4249_s2 + $0x1b8] sm:$0xff]  ;;  %v3750_v30 = vpack.c.bf16 %v73_v21, %v69_v17  ;;  %v75_v32 = vld [vmem:[%s4249_s2 + $0x180] sm:$0xff] }
  0x15   :  { %2800 = vmatpush1.bf16.msra.mxu1 %v3678_v57  ;;  %2770 = vmatprep.subr.bf16.mxu0 %v3680_v58  ;;  %v3752_v31 = vpack.c.bf16 %v80_v23, %v76_v22  ;;  %v79_v34 = vld [vmem:[%s4249_s2 + $0x1a0] sm:$0xff]  ;;  %v77_v35 = vld [vmem:[%s4249_s2 + $0x190] sm:$0xff]  ;;  %v3764_v36 = vpack.c.bf16 %v82_v26, %v78_v25  ;;  %v84_v39 = vld [vmem:[%s4249_s2 + $0x1c8] sm:$0xff]  ;;  %v95_v6 = vsub.s32 0, %v94_v5  ;;  %v99_v9 = vsub.s32 1, %v94_v5 }
  0x16   :  { %2802 = vmatprep.subr.bf16.mxu1 %v3692_v62  ;;  %v81_v38 = vld [vmem:[%s4249_s2 + $0x1b0] sm:$0xff]  ;;  %v88_v40 = vld [vmem:[%s4249_s2 + $0x1e8] sm:$0xff]  ;;  %v86_v42 = vld [vmem:[%s4249_s2 + $0x1d8] sm:$0xff]  ;;  %v3782_v44 = vpack.c.bf16 %v79_v34, %v75_v32  ;;  %v107_v21 = vsub.s32 3, %v94_v5 }
  0x17   :  { %v90_v43 = vld [vmem:[%s4249_s2 + $0x1f8] sm:$0xff]  ;;  %v3786_v47 = vpack.c.bf16 %v81_v38, %v77_v35  ;;  %v3788_v48 = vpack.c.bf16 %v88_v40, %v84_v39  ;;  %v83_v49 = vld [vmem:[%s4249_s2 + $0x1c0] sm:$0xff]  ;;  %v85_v53 = vld [vmem:[%s4249_s2 + $0x1d0] sm:$0xff]  ;;  %v103_v39 = vsub.s32 2, %v94_v5 }
  0x18   :  { %2772 = vmatpush1.bf16.msra.mxu0 %v3710_v10  ;;  %v87_v51 = vld [vmem:[%s4249_s2 + $0x1e0] sm:$0xff]  ;;  %v3797_v52 = vpack.c.bf16 %v90_v43, %v86_v42  ;;  %v89_v54 = vld [vmem:[%s4249_s2 + $0x1f0] sm:$0xff] }
  0x19   :  { %2804 = vmatpush1.bf16.msra.mxu1 %v3714_v12  ;;  %2774 = vmatprep.subr.bf16.mxu0 %v3716_v13  ;;  %v3806_v55 = vpack.c.bf16 %v87_v51, %v83_v49  ;;  %v3810_v59 = vpack.c.bf16 %v89_v54, %v85_v53  ;;  %v113_v60 = vld [vmem:[#allocation2] sm:$0x3]  ;;  %v2683_v61 = vld [vmem:[%s4250_s0 + $0x2] sm:$0x3] }
  0x1a   :  { %2806 = vmatprep.subr.bf16.mxu1 %v3728_v18  ;;  %v91_v8 = vld [vmem:[%s4251_s3] sm:$0xf] }
  0x1b   :  { %v3871_v14 = vrot.slane %v91_v8, %v95_v6  ;;  %v3873_v16 = vrot.slane %v91_v8, %v99_v9  ;;  %v3877_v38 = vrot.slane %v91_v8, %v107_v21  ;;  %v3880_v42 = vrot.slane %v91_v8, %v103_v39  ;;  %v114_v6 = vld [vmem:[#allocation3] sm:$0x3] }
  0x1c   :  { %2776 = vmatpush1.bf16.msra.mxu0 %v3746_v27 }
  0x1d   :  { %2808 = vmatpush1.bf16.msra.mxu1 %v3750_v30  ;;  %2778 = vmatprep.subr.bf16.mxu0 %v3752_v31 }
  0x1e   :  { %2810 = vmatprep.subr.bf16.mxu1 %v3764_v36 }
  0x20   :  { %2780 = vmatpush1.bf16.msra.mxu0 %v3782_v44 }
  0x21   :  { %2812 = vmatpush1.bf16.msra.mxu1 %v3786_v47  ;;  %2782 = vmatprep.subr.bf16.mxu0 %v3788_v48 }
  0x22   :  { %2814 = vmatprep.subr.bf16.mxu1 %v3797_v52 }
  0x24   :  { %2784 = vmatpush1.bf16.msra.mxu0 %v3806_v55 }
  0x25   :  { %2816 = vmatpush1.bf16.msra.mxu1 %v3810_v59  ;;  %2684 = vmatprep.subr.msk.mxu0 %vm120_vm0, %v3491_v0 }
  0x26   :  { %2687 = vmatprep.subr.msk.mxu1 %vm120_vm0, %v3496_v1 }
  0x27   :  { %340 = vmatmul.mubr.f32.vlgmr.msra.gmra.mrb[0].mxu0 %v113_v60 }
  0x28   :  { %411 = vmatmul.mubr.f32.vlgmr.msra.gmra.mrb[0].mxu1 %v113_v60  ;;  %2685 = vmatpush1.msk.msra.mxu0 %vm120_vm0, %v3501_v2 }
  0x29   :  { %2688 = vmatpush1.msk.msra.mxu1 %vm120_vm0, %v3514_v4  ;;  %514 = vmatprep.mubr.f32.mxu0 %v3462_v3 }
  0x2a   :  { %585 = vmatprep.mubr.f32.mxu1 %v3462_v3  ;;  %2818 = vmatprep.subr.bf16.mxu0 %v3526_v7 }
  0x2b   :  { %2850 = vmatprep.subr.bf16.mxu1 %v3537_v11  ;;  %2686 = vmatmul.mubr.msk.f32.vlgmr.msra.gmra.mrb[2].mxu0 %vm116_vm1, %v2683_v61 }
  0x2c   :  { %2689 = vmatmul.mubr.msk.f32.vlgmr.msra.gmra.mrb[2].mxu1 %vm116_vm1, %v2683_v61  ;;  %2820 = vmatpush1.bf16.msra.mxu0 %v3551_v15 }
  0x2d   :  { %2852 = vmatpush1.bf16.msra.mxu1 %v3564_v19  ;;  %2822 = vmatprep.subr.bf16.mxu0 %v3566_v20 }
  0x2e   :  { %2854 = vmatprep.subr.bf16.mxu1 %v3579_v24  ;;  %656 = vmatprep.mubr.f32.mxu0 %v3462_v3 }
  0x2f   :  { %727 = vmatprep.mubr.f32.mxu1 %v3462_v3 }
  0x30   :  { %2824 = vmatpush1.bf16.msra.mxu0 %v3592_v28 }
  0x31   :  { %2856 = vmatpush1.bf16.msra.mxu1 %v3594_v29  ;;  %2826 = vmatprep.subr.bf16.mxu0 %v3606_v33 }
  0x32   :  { %2858 = vmatprep.subr.bf16.mxu1 %v3617_v37 }
  0x34   :  { %2828 = vmatpush1.bf16.msra.mxu0 %v3629_v41 }
  0x35   :  { %2860 = vmatpush1.bf16.msra.mxu1 %v3642_v45  ;;  %2830 = vmatprep.subr.bf16.mxu0 %v3644_v46 }
  0x36   :  { %2862 = vmatprep.subr.bf16.mxu1 %v3656_v50 }
  0x38   :  { %2832 = vmatpush1.bf16.msra.mxu0 %v3674_v56 }
  0x39   :  { %2864 = vmatpush1.bf16.msra.mxu1 %v3678_v57  ;;  %2834 = vmatprep.subr.bf16.mxu0 %v3680_v58 }
  0x3a   :  { %2866 = vmatprep.subr.bf16.mxu1 %v3692_v62 }
  0x3c   :  { %2836 = vmatpush1.bf16.msra.mxu0 %v3710_v10 }
  0x3d   :  { %2868 = vmatpush1.bf16.msra.mxu1 %v3714_v12  ;;  %2838 = vmatprep.subr.bf16.mxu0 %v3716_v13 }
  0x3e   :  { %2870 = vmatprep.subr.bf16.mxu1 %v3728_v18 }
  0x40   :  { %2840 = vmatpush1.bf16.msra.mxu0 %v3746_v27 }
  0x41   :  { %2872 = vmatpush1.bf16.msra.mxu1 %v3750_v30  ;;  %2842 = vmatprep.subr.bf16.mxu0 %v3752_v31 }
  0x42   :  { %2874 = vmatprep.subr.bf16.mxu1 %v3764_v36 }
  0x44   :  { %2844 = vmatpush1.bf16.msra.mxu0 %v3782_v44 }
  0x45   :  { %2876 = vmatpush1.bf16.msra.mxu1 %v3786_v47  ;;  %2846 = vmatprep.subr.bf16.mxu0 %v3788_v48 }
  0x46   :  { %2878 = vmatprep.subr.bf16.mxu1 %v3797_v52 }
  0x48   :  { %2848 = vmatpush1.bf16.msra.mxu0 %v3806_v55 }
  0x49   :  { %2880 = vmatpush1.bf16.msra.mxu1 %v3810_v59  ;;  %2694 = vmatprep.subr.msk.mxu0 %vm120_vm0, %v3491_v0 }
  0x4a   :  { %2697 = vmatprep.subr.msk.mxu1 %vm120_vm0, %v3496_v1 }
  0xfa   :  { %v341_v17 = vpop.f32.mrb[0].mxu0 }
  0xfb   :  { %v3265_v22 = vadd.f32 %v341_v17, %v3871_v14  ;;  %v412_v23 = vpop.f32.mrb[0].mxu1  ;;  %v343_v25 = vpop.f32.mrb[1].mxu0 }
  0xfc   :  { %v3266_v26 = vadd.f32 %v343_v25, %v3873_v16  ;;  %v414_v32 = vpop.f32.mrb[1].mxu1  ;;  %v3267_v49 = vadd.f32 %v412_v23, %v3880_v42 }
  0xfd   :  { %v2680_v34 = vmul.f32 -1.442695, %v3265_v22  ;;  %v3268_v40 = vadd.f32 %v414_v32, %v3877_v38  ;;  %v2693_v32 = vld [vmem:[%s4250_s0 + $0x4] sm:$0x3] }
  0xfe   :  { %v2681_v35 = vmul.f32 -1.442695, %v3266_v26 }
  0xff   :  { %3330 = vpow2.f32 %v2680_v34  ;;  %v2682_v43 = vmul.f32 -1.442695, %v3268_v40 }
 0x100   :  { %3332 = vpow2.f32 %v2681_v35 }
 0x101   :  { %3334 = vpow2.f32 %v2682_v43 }
 0x102   :  { %3336 = vtanh.f32 %v3267_v49 }
 0x109   :  { %v3331_v51 = vpop.eup %3330 }
 0x10a   :  { %v3333_v53 = vpop.eup %3332  ;;  %v424_v54 = vadd.f32 1.0, %v3331_v51 }
 0x10b   :  { %v430_v60 = vadd.f32 1.0, %v3333_v53  ;;  %v3335_v61 = vpop.eup %3334 }
 0x10c   :  { %3338 = vrcp.f32 %v424_v54  ;;  %v3337_v63 = vpop.eup %3336  ;;  %v437_v21 = vadd.f32 1.0, %v3335_v61 }
 0x10d   :  { %3340 = vrcp.f32 %v430_v60 }
 0x10e   :  { %3342 = vrcp.f32 %v437_v21 }
 0x116   :  { %v3339_v5 = vpop.eup %3338 }
 0x117   :  { %v3341_v9 = vpop.eup %3340  ;;  %v441_v17 = vmul.f32 %v3339_v5, %v3337_v63 }
 0x118   :  { %v440_v8 = vmul.f32 %v3341_v9, %v114_v6  ;;  %v3343_v23 = vpop.eup %3342 }
 0x11a   :  { %v3883_v22 = vadd.f32 %v441_v17, %v440_v8 }
 0x11c   :  { %3344 = vtanh.f32 %v3883_v22 }
 0x126   :  { %v3345_v25 = vpop.eup %3344 }
 0x127   :  { %v444_v26 = vmul.f32 %v3345_v25, %v3343_v23 }
 0x129   :  { %657 = vmatmul.mubr.f32.vlgmr.msra.gmra.mrb[2].mxu0 %v444_v26  ;;  %728 = vmatmul.mubr.f32.vlgmr.msra.gmra.mrb[2].mxu1 %v444_v26 }
 0x12a   :  { %2695 = vmatpush1.msk.msra.mxu0 %vm120_vm0, %v3501_v2  ;;  %2698 = vmatpush1.msk.msra.mxu1 %vm120_vm0, %v3514_v4 }
 0x12b   :  { %831 = vmatprep.mubr.f32.mxu0 %v3462_v3  ;;  %902 = vmatprep.mubr.f32.mxu1 %v3462_v3 }
 0x12c   :  { %2882 = vmatprep.subr.bf16.mxu0 %v3526_v7  ;;  %2914 = vmatprep.subr.bf16.mxu1 %v3537_v11 }
 0x12d   :  { %2696 = vmatmul.mubr.msk.f32.vlgmr.msra.gmra.mrb[4].mxu0 %vm116_vm1, %v2693_v32  ;;  %2699 = vmatmul.mubr.msk.f32.vlgmr.msra.gmra.mrb[4].mxu1 %vm116_vm1, %v2693_v32 }
 0x12e   :  { %2884 = vmatpush1.bf16.msra.mxu0 %v3551_v15  ;;  %2916 = vmatpush1.bf16.msra.mxu1 %v3564_v19 }
 0x12f   :  { %2886 = vmatprep.subr.bf16.mxu0 %v3566_v20  ;;  %2918 = vmatprep.subr.bf16.mxu1 %v3579_v24 }
 0x130   :  { %973 = vmatprep.mubr.f32.mxu0 %v3462_v3  ;;  %1044 = vmatprep.mubr.f32.mxu1 %v3462_v3 }
 0x132   :  { %2888 = vmatpush1.bf16.msra.mxu0 %v3592_v28  ;;  %2920 = vmatpush1.bf16.msra.mxu1 %v3594_v29 }
 0x133   :  { %2890 = vmatprep.subr.bf16.mxu0 %v3606_v33  ;;  %2922 = vmatprep.subr.bf16.mxu1 %v3617_v37 }
 0x136   :  { %2892 = vmatpush1.bf16.msra.mxu0 %v3629_v41  ;;  %2924 = vmatpush1.bf16.msra.mxu1 %v3642_v45 }
 0x137   :  { %2894 = vmatprep.subr.bf16.mxu0 %v3644_v46  ;;  %2926 = vmatprep.subr.bf16.mxu1 %v3656_v50 }
 0x13a   :  { %2896 = vmatpush1.bf16.msra.mxu0 %v3674_v56  ;;  %2928 = vmatpush1.bf16.msra.mxu1 %v3678_v57 }
 0x13b   :  { %2898 = vmatprep.subr.bf16.mxu0 %v3680_v58  ;;  %2930 = vmatprep.subr.bf16.mxu1 %v3692_v62 }
 0x13e   :  { %2900 = vmatpush1.bf16.msra.mxu0 %v3710_v10  ;;  %2932 = vmatpush1.bf16.msra.mxu1 %v3714_v12 }
 0x13f   :  { %2902 = vmatprep.subr.bf16.mxu0 %v3716_v13  ;;  %2934 = vmatprep.subr.bf16.mxu1 %v3728_v18 }
 0x142   :  { %2904 = vmatpush1.bf16.msra.mxu0 %v3746_v27  ;;  %2936 = vmatpush1.bf16.msra.mxu1 %v3750_v30 }
 0x143   :  { %2906 = vmatprep.subr.bf16.mxu0 %v3752_v31  ;;  %2938 = vmatprep.subr.bf16.mxu1 %v3764_v36 }
 0x146   :  { %2908 = vmatpush1.bf16.msra.mxu0 %v3782_v44  ;;  %2940 = vmatpush1.bf16.msra.mxu1 %v3786_v47 }
 0x147   :  { %2910 = vmatprep.subr.bf16.mxu0 %v3788_v48  ;;  %2942 = vmatprep.subr.bf16.mxu1 %v3797_v52 }
 0x14a   :  { %2912 = vmatpush1.bf16.msra.mxu0 %v3806_v55  ;;  %2944 = vmatpush1.bf16.msra.mxu1 %v3810_v59 }
 0x14b   :  { %2704 = vmatprep.subr.msk.mxu0 %vm120_vm0, %v3491_v0  ;;  %2707 = vmatprep.subr.msk.mxu1 %vm120_vm0, %v3496_v1 }
 0x1fc   :  { %v658_v34 = vpop.f32.mrb[2].mxu0  ;;  %v729_v35 = vpop.f32.mrb[2].mxu1 }
 0x1fd   :  { %v3269_v39 = vadd.f32 %v658_v34, %v3871_v14  ;;  %v660_v40 = vpop.f32.mrb[3].mxu0  ;;  %v731_v43 = vpop.f32.mrb[3].mxu1  ;;  %v3271_v61 = vadd.f32 %v729_v35, %v3880_v42 }
 0x1fe   :  { %v3270_v49 = vadd.f32 %v660_v40, %v3873_v16  ;;  %v3272_v54 = vadd.f32 %v731_v43, %v3877_v38 }
 0x1ff   :  { %v2690_v51 = vmul.f32 -1.442695, %v3269_v39 }
 0x200   :  { %v2691_v53 = vmul.f32 -1.442695, %v3270_v49  ;;  %v2692_v60 = vmul.f32 -1.442695, %v3272_v54 }
 0x201   :  { %3346 = vpow2.f32 %v2690_v51 }
 0x202   :  { %3348 = vpow2.f32 %v2691_v53 }
 0x203   :  { %3350 = vpow2.f32 %v2692_v60 }
 0x204   :  { %3352 = vtanh.f32 %v3271_v61 }
 0x20b   :  { %v3347_v63 = vpop.eup %3346 }
 0x20c   :  { %v3349_v6 = vpop.eup %3348  ;;  %v741_v5 = vadd.f32 1.0, %v3347_v63 }
 0x20d   :  { %v747_v9 = vadd.f32 1.0, %v3349_v6  ;;  %v3351_v17 = vpop.eup %3350 }
 0x20e   :  { %3354 = vrcp.f32 %v741_v5  ;;  %v3353_v21 = vpop.eup %3352  ;;  %v754_v26 = vadd.f32 1.0, %v3351_v17 }
 0x20f   :  { %3356 = vrcp.f32 %v747_v9 }
 0x210   :  { %3358 = vrcp.f32 %v754_v26 }
 0x218   :  { %v3355_v8 = vpop.eup %3354 }
 0x219   :  { %v3357_v23 = vpop.eup %3356  ;;  %v758_v25 = vmul.f32 %v3355_v8, %v3353_v21 }
 0x21a   :  { %v757_v32 = vmul.f32 %v3357_v23, %v3883_v22  ;;  %v3359_v35 = vpop.eup %3358  ;;  %v2703_v22 = vld [vmem:[%s4250_s0 + $0x6] sm:$0x3] }
 0x21c   :  { %v3940_v34 = vadd.f32 %v758_v25, %v757_v32 }
 0x21e   :  { %3360 = vtanh.f32 %v3940_v34 }
 0x228   :  { %v3361_v39 = vpop.eup %3360 }
 0x229   :  { %v761_v40 = vmul.f32 %v3361_v39, %v3359_v35 }
 0x22b   :  { %974 = vmatmul.mubr.f32.vlgmr.msra.gmra.mrb[4].mxu0 %v761_v40  ;;  %1045 = vmatmul.mubr.f32.vlgmr.msra.gmra.mrb[4].mxu1 %v761_v40 }
 0x22c   :  { %2705 = vmatpush1.msk.msra.mxu0 %vm120_vm0, %v3501_v2  ;;  %2708 = vmatpush1.msk.msra.mxu1 %vm120_vm0, %v3514_v4 }
 0x22d   :  { %1148 = vmatprep.mubr.f32.mxu0 %v3462_v3  ;;  %1219 = vmatprep.mubr.f32.mxu1 %v3462_v3 }
 0x22e   :  { %2946 = vmatprep.subr.bf16.mxu0 %v3526_v7  ;;  %2978 = vmatprep.subr.bf16.mxu1 %v3537_v11 }
 0x22f   :  { %2706 = vmatmul.mubr.msk.f32.vlgmr.msra.gmra.mrb[6].mxu0 %vm116_vm1, %v2703_v22  ;;  %2709 = vmatmul.mubr.msk.f32.vlgmr.msra.gmra.mrb[6].mxu1 %vm116_vm1, %v2703_v22 }
 0x230   :  { %2948 = vmatpush1.bf16.msra.mxu0 %v3551_v15  ;;  %2980 = vmatpush1.bf16.msra.mxu1 %v3564_v19 }
 0x231   :  { %2950 = vmatprep.subr.bf16.mxu0 %v3566_v20  ;;  %2982 = vmatprep.subr.bf16.mxu1 %v3579_v24 }
 0x232   :  { %1290 = vmatprep.mubr.f32.mxu0 %v3462_v3  ;;  %1361 = vmatprep.mubr.f32.mxu1 %v3462_v3 }
 0x234   :  { %2952 = vmatpush1.bf16.msra.mxu0 %v3592_v28  ;;  %2984 = vmatpush1.bf16.msra.mxu1 %v3594_v29 }
 0x235   :  { %2954 = vmatprep.subr.bf16.mxu0 %v3606_v33  ;;  %2986 = vmatprep.subr.bf16.mxu1 %v3617_v37 }
 0x238   :  { %2956 = vmatpush1.bf16.msra.mxu0 %v3629_v41  ;;  %2988 = vmatpush1.bf16.msra.mxu1 %v3642_v45 }
 0x239   :  { %2958 = vmatprep.subr.bf16.mxu0 %v3644_v46  ;;  %2990 = vmatprep.subr.bf16.mxu1 %v3656_v50 }
 0x23c   :  { %2960 = vmatpush1.bf16.msra.mxu0 %v3674_v56  ;;  %2992 = vmatpush1.bf16.msra.mxu1 %v3678_v57 }
 0x23d   :  { %2962 = vmatprep.subr.bf16.mxu0 %v3680_v58  ;;  %2994 = vmatprep.subr.bf16.mxu1 %v3692_v62 }
 0x240   :  { %2964 = vmatpush1.bf16.msra.mxu0 %v3710_v10  ;;  %2996 = vmatpush1.bf16.msra.mxu1 %v3714_v12 }
 0x241   :  { %2966 = vmatprep.subr.bf16.mxu0 %v3716_v13  ;;  %2998 = vmatprep.subr.bf16.mxu1 %v3728_v18 }
 0x244   :  { %2968 = vmatpush1.bf16.msra.mxu0 %v3746_v27  ;;  %3000 = vmatpush1.bf16.msra.mxu1 %v3750_v30 }
 0x245   :  { %2970 = vmatprep.subr.bf16.mxu0 %v3752_v31  ;;  %3002 = vmatprep.subr.bf16.mxu1 %v3764_v36 }
 0x248   :  { %2972 = vmatpush1.bf16.msra.mxu0 %v3782_v44  ;;  %3004 = vmatpush1.bf16.msra.mxu1 %v3786_v47 }
 0x249   :  { %2974 = vmatprep.subr.bf16.mxu0 %v3788_v48  ;;  %3006 = vmatprep.subr.bf16.mxu1 %v3797_v52 }
 0x24c   :  { %2976 = vmatpush1.bf16.msra.mxu0 %v3806_v55  ;;  %3008 = vmatpush1.bf16.msra.mxu1 %v3810_v59 }
 0x24d   :  { %2714 = vmatprep.subr.msk.mxu0 %vm120_vm0, %v3491_v0  ;;  %2717 = vmatprep.subr.msk.mxu1 %vm120_vm0, %v3496_v1 }
 0x2fe   :  { %v975_v43 = vpop.f32.mrb[4].mxu0  ;;  %v1046_v49 = vpop.f32.mrb[4].mxu1 }
 0x2ff   :  { %v3273_v51 = vadd.f32 %v975_v43, %v3871_v14  ;;  %v977_v53 = vpop.f32.mrb[5].mxu0  ;;  %v1048_v54 = vpop.f32.mrb[5].mxu1  ;;  %v3275_v9 = vadd.f32 %v1046_v49, %v3880_v42 }
 0x300   :  { %v3274_v60 = vadd.f32 %v977_v53, %v3873_v16  ;;  %v3276_v6 = vadd.f32 %v1048_v54, %v3877_v38 }
 0x301   :  { %v2700_v61 = vmul.f32 -1.442695, %v3273_v51 }
 0x302   :  { %v2701_v63 = vmul.f32 -1.442695, %v3274_v60  ;;  %v2702_v5 = vmul.f32 -1.442695, %v3276_v6 }
 0x303   :  { %3362 = vpow2.f32 %v2700_v61 }
 0x304   :  { %3364 = vpow2.f32 %v2701_v63 }
 0x305   :  { %3366 = vpow2.f32 %v2702_v5 }
 0x306   :  { %3368 = vtanh.f32 %v3275_v9 }
 0x30d   :  { %v3363_v17 = vpop.eup %3362 }
 0x30e   :  { %v3365_v21 = vpop.eup %3364  ;;  %v1058_v8 = vadd.f32 1.0, %v3363_v17 }
 0x30f   :  { %v1064_v23 = vadd.f32 1.0, %v3365_v21  ;;  %v3367_v25 = vpop.eup %3366 }
 0x310   :  { %3370 = vrcp.f32 %v1058_v8  ;;  %v3369_v26 = vpop.eup %3368  ;;  %v1071_v40 = vadd.f32 1.0, %v3367_v25 }
 0x311   :  { %3372 = vrcp.f32 %v1064_v23 }
 0x312   :  { %3374 = vrcp.f32 %v1071_v40 }
 0x31a   :  { %v3371_v32 = vpop.eup %3370 }
 0x31b   :  { %v3373_v35 = vpop.eup %3372  ;;  %v1075_v39 = vmul.f32 %v3371_v32, %v3369_v26 }
 0x31c   :  { %v1074_v22 = vmul.f32 %v3373_v35, %v3940_v34  ;;  %v3375_v49 = vpop.eup %3374  ;;  %v2713_v34 = vld [vmem:[%s4250_s0 + $0x8] sm:$0x3] }
 0x31e   :  { %v3997_v43 = vadd.f32 %v1075_v39, %v1074_v22 }
 0x320   :  { %3376 = vtanh.f32 %v3997_v43 }
 0x32a   :  { %v3377_v51 = vpop.eup %3376 }
 0x32b   :  { %v1078_v53 = vmul.f32 %v3377_v51, %v3375_v49 }
 0x32d   :  { %1291 = vmatmul.mubr.f32.vlgmr.msra.gmra.mrb[6].mxu0 %v1078_v53  ;;  %1362 = vmatmul.mubr.f32.vlgmr.msra.gmra.mrb[6].mxu1 %v1078_v53 }
 0x32e   :  { %2715 = vmatpush1.msk.msra.mxu0 %vm120_vm0, %v3501_v2  ;;  %2718 = vmatpush1.msk.msra.mxu1 %vm120_vm0, %v3514_v4 }
 0x32f   :  { %1465 = vmatprep.mubr.f32.mxu0 %v3462_v3  ;;  %1536 = vmatprep.mubr.f32.mxu1 %v3462_v3 }
 0x330   :  { %3010 = vmatprep.subr.bf16.mxu0 %v3526_v7  ;;  %3042 = vmatprep.subr.bf16.mxu1 %v3537_v11 }
 0x331   :  { %2716 = vmatmul.mubr.msk.f32.vlgmr.msra.gmra.mrb[8].mxu0 %vm116_vm1, %v2713_v34  ;;  %2719 = vmatmul.mubr.msk.f32.vlgmr.msra.gmra.mrb[8].mxu1 %vm116_vm1, %v2713_v34 }
 0x332   :  { %3012 = vmatpush1.bf16.msra.mxu0 %v3551_v15  ;;  %3044 = vmatpush1.bf16.msra.mxu1 %v3564_v19 }
 0x333   :  { %3014 = vmatprep.subr.bf16.mxu0 %v3566_v20  ;;  %3046 = vmatprep.subr.bf16.mxu1 %v3579_v24 }
 0x334   :  { %1607 = vmatprep.mubr.f32.mxu0 %v3462_v3  ;;  %1678 = vmatprep.mubr.f32.mxu1 %v3462_v3 }
 0x336   :  { %3016 = vmatpush1.bf16.msra.mxu0 %v3592_v28  ;;  %3048 = vmatpush1.bf16.msra.mxu1 %v3594_v29 }
 0x337   :  { %3018 = vmatprep.subr.bf16.mxu0 %v3606_v33  ;;  %3050 = vmatprep.subr.bf16.mxu1 %v3617_v37 }
 0x33a   :  { %3020 = vmatpush1.bf16.msra.mxu0 %v3629_v41  ;;  %3052 = vmatpush1.bf16.msra.mxu1 %v3642_v45 }
 0x33b   :  { %3022 = vmatprep.subr.bf16.mxu0 %v3644_v46  ;;  %3054 = vmatprep.subr.bf16.mxu1 %v3656_v50 }
 0x33e   :  { %3024 = vmatpush1.bf16.msra.mxu0 %v3674_v56  ;;  %3056 = vmatpush1.bf16.msra.mxu1 %v3678_v57 }
 0x33f   :  { %3026 = vmatprep.subr.bf16.mxu0 %v3680_v58  ;;  %3058 = vmatprep.subr.bf16.mxu1 %v3692_v62 }
 0x342   :  { %3028 = vmatpush1.bf16.msra.mxu0 %v3710_v10  ;;  %3060 = vmatpush1.bf16.msra.mxu1 %v3714_v12 }
 0x343   :  { %3030 = vmatprep.subr.bf16.mxu0 %v3716_v13  ;;  %3062 = vmatprep.subr.bf16.mxu1 %v3728_v18 }
 0x346   :  { %3032 = vmatpush1.bf16.msra.mxu0 %v3746_v27  ;;  %3064 = vmatpush1.bf16.msra.mxu1 %v3750_v30 }
 0x347   :  { %3034 = vmatprep.subr.bf16.mxu0 %v3752_v31  ;;  %3066 = vmatprep.subr.bf16.mxu1 %v3764_v36 }
 0x34a   :  { %3036 = vmatpush1.bf16.msra.mxu0 %v3782_v44  ;;  %3068 = vmatpush1.bf16.msra.mxu1 %v3786_v47 }
 0x34b   :  { %3038 = vmatprep.subr.bf16.mxu0 %v3788_v48  ;;  %3070 = vmatprep.subr.bf16.mxu1 %v3797_v52 }
 0x34e   :  { %3040 = vmatpush1.bf16.msra.mxu0 %v3806_v55  ;;  %3072 = vmatpush1.bf16.msra.mxu1 %v3810_v59 }
 0x34f   :  { %2724 = vmatprep.subr.msk.mxu0 %vm120_vm0, %v3491_v0  ;;  %2727 = vmatprep.subr.msk.mxu1 %vm120_vm0, %v3496_v1 }
 0x400   :  { %v1292_v54 = vpop.f32.mrb[6].mxu0  ;;  %v1363_v60 = vpop.f32.mrb[6].mxu1 }
 0x401   :  { %v3277_v61 = vadd.f32 %v1292_v54, %v3871_v14  ;;  %v1294_v63 = vpop.f32.mrb[7].mxu0  ;;  %v1365_v6 = vpop.f32.mrb[7].mxu1  ;;  %v3279_v0 = vadd.f32 %v1363_v60, %v3880_v42 }
 0x402   :  { %v3278_v5 = vadd.f32 %v1294_v63, %v3873_v16  ;;  %v3280_v21 = vadd.f32 %v1365_v6, %v3877_v38 }
 0x403   :  { %v2710_v9 = vmul.f32 -1.442695, %v3277_v61 }
 0x404   :  { %v2711_v17 = vmul.f32 -1.442695, %v3278_v5  ;;  %v2712_v8 = vmul.f32 -1.442695, %v3280_v21 }
 0x405   :  { %3378 = vpow2.f32 %v2710_v9 }
 0x406   :  { %3380 = vpow2.f32 %v2711_v17 }
 0x407   :  { %3382 = vpow2.f32 %v2712_v8 }
 0x408   :  { %3384 = vtanh.f32 %v3279_v0 }
 0x40f   :  { %v3379_v23 = vpop.eup %3378 }
 0x410   :  { %v3381_v25 = vpop.eup %3380  ;;  %v1375_v1 = vadd.f32 1.0, %v3379_v23 }
 0x411   :  { %v1381_v26 = vadd.f32 1.0, %v3381_v25  ;;  %v3383_v32 = vpop.eup %3382 }
 0x412   :  { %3386 = vrcp.f32 %v1375_v1  ;;  %v3385_v35 = vpop.eup %3384  ;;  %v1388_v49 = vadd.f32 1.0, %v3383_v32 }
 0x413   :  { %3388 = vrcp.f32 %v1381_v26 }
 0x414   :  { %3390 = vrcp.f32 %v1388_v49 }
 0x41c   :  { %v3387_v39 = vpop.eup %3386 }
 0x41d   :  { %v3389_v40 = vpop.eup %3388  ;;  %v1392_v22 = vmul.f32 %v3387_v39, %v3385_v35 }
 0x41e   :  { %v1391_v51 = vmul.f32 %v3389_v40, %v3997_v43  ;;  %v3391_v34 = vpop.eup %3390  ;;  %v2723_v43 = vld [vmem:[%s4250_s0 + $0xa] sm:$0x3] }
 0x420   :  { %v4054_v53 = vadd.f32 %v1392_v22, %v1391_v51 }
 0x422   :  { %3392 = vtanh.f32 %v4054_v53 }
 0x42c   :  { %v3393_v54 = vpop.eup %3392 }
 0x42d   :  { %v1395_v60 = vmul.f32 %v3393_v54, %v3391_v34 }
 0x42f   :  { %1608 = vmatmul.mubr.f32.vlgmr.msra.gmra.mrb[8].mxu0 %v1395_v60  ;;  %1679 = vmatmul.mubr.f32.vlgmr.msra.gmra.mrb[8].mxu1 %v1395_v60 }
 0x430   :  { %2725 = vmatpush1.msk.msra.mxu0 %vm120_vm0, %v3501_v2  ;;  %2728 = vmatpush1.msk.msra.mxu1 %vm120_vm0, %v3514_v4  ;;  %v4105_v2 = vld [vmem:[%s4248_s1 + $0x8] sm:$0x1f]  ;;  %v4112_v4 = vld [vmem:[%s4248_s1 + $0x18] sm:$0x1f] }
 0x431   :  { %1782 = vmatprep.mubr.f32.mxu0 %v3462_v3  ;;  %1853 = vmatprep.mubr.f32.mxu1 %v3462_v3 }
 0x432   :  { %3074 = vmatprep.subr.bf16.mxu0 %v3526_v7  ;;  %3106 = vmatprep.subr.bf16.mxu1 %v3537_v11 }
 0x433   :  { %2726 = vmatmul.mubr.msk.f32.vlgmr.msra.gmra.mrb[10].mxu0 %vm116_vm1, %v2723_v43  ;;  %2729 = vmatmul.mubr.msk.f32.vlgmr.msra.gmra.mrb[10].mxu1 %vm116_vm1, %v2723_v43 }
 0x434   :  { %3076 = vmatpush1.bf16.msra.mxu0 %v3551_v15  ;;  %3108 = vmatpush1.bf16.msra.mxu1 %v3564_v19 }
 0x435   :  { %3078 = vmatprep.subr.bf16.mxu0 %v3566_v20  ;;  %3110 = vmatprep.subr.bf16.mxu1 %v3579_v24 }
 0x436   :  { %1924 = vmatprep.mubr.f32.mxu0 %v3462_v3  ;;  %1995 = vmatprep.mubr.f32.mxu1 %v3462_v3 }
 0x438   :  { %3080 = vmatpush1.bf16.msra.mxu0 %v3592_v28  ;;  %3112 = vmatpush1.bf16.msra.mxu1 %v3594_v29 }
 0x439   :  { %3082 = vmatprep.subr.bf16.mxu0 %v3606_v33  ;;  %3114 = vmatprep.subr.bf16.mxu1 %v3617_v37 }
 0x43c   :  { %3084 = vmatpush1.bf16.msra.mxu0 %v3629_v41  ;;  %3116 = vmatpush1.bf16.msra.mxu1 %v3642_v45 }
 0x43d   :  { %3086 = vmatprep.subr.bf16.mxu0 %v3644_v46  ;;  %3118 = vmatprep.subr.bf16.mxu1 %v3656_v50 }
 0x440   :  { %3088 = vmatpush1.bf16.msra.mxu0 %v3674_v56  ;;  %3120 = vmatpush1.bf16.msra.mxu1 %v3678_v57 }
 0x441   :  { %3090 = vmatprep.subr.bf16.mxu0 %v3680_v58  ;;  %3122 = vmatprep.subr.bf16.mxu1 %v3692_v62 }
 0x444   :  { %3092 = vmatpush1.bf16.msra.mxu0 %v3710_v10  ;;  %3124 = vmatpush1.bf16.msra.mxu1 %v3714_v12 }
 0x445   :  { %3094 = vmatprep.subr.bf16.mxu0 %v3716_v13  ;;  %3126 = vmatprep.subr.bf16.mxu1 %v3728_v18 }
 0x448   :  { %3096 = vmatpush1.bf16.msra.mxu0 %v3746_v27  ;;  %3128 = vmatpush1.bf16.msra.mxu1 %v3750_v30 }
 0x449   :  { %3098 = vmatprep.subr.bf16.mxu0 %v3752_v31  ;;  %3130 = vmatprep.subr.bf16.mxu1 %v3764_v36 }
 0x44c   :  { %3100 = vmatpush1.bf16.msra.mxu0 %v3782_v44  ;;  %3132 = vmatpush1.bf16.msra.mxu1 %v3786_v47 }
 0x44d   :  { %3102 = vmatprep.subr.bf16.mxu0 %v3788_v48  ;;  %3134 = vmatprep.subr.bf16.mxu1 %v3797_v52 }
 0x450   :  { %3104 = vmatpush1.bf16.msra.mxu0 %v3806_v55  ;;  %3136 = vmatpush1.bf16.msra.mxu1 %v3810_v59 }
 0x451   :  { %2734 = vmatprep.subr.msk.mxu0 %vm120_vm0, %v4105_v2  ;;  %2737 = vmatprep.subr.msk.mxu1 %vm120_vm0, %v4112_v4 }
 0x502   :  { %v1609_v61 = vpop.f32.mrb[8].mxu0  ;;  %v1680_v63 = vpop.f32.mrb[8].mxu1 }
 0x503   :  { %v3281_v6 = vadd.f32 %v1609_v61, %v3871_v14  ;;  %v1611_v5 = vpop.f32.mrb[9].mxu0  ;;  %v1682_v9 = vpop.f32.mrb[9].mxu1  ;;  %v3283_v25 = vadd.f32 %v1680_v63, %v3880_v42 }
 0x504   :  { %v3282_v17 = vadd.f32 %v1611_v5, %v3873_v16  ;;  %v3284_v0 = vadd.f32 %v1682_v9, %v3877_v38  ;;  %v2733_v5 = vld [vmem:[%s4250_s0 + $0xc] sm:$0x3] }
 0x505   :  { %v2720_v21 = vmul.f32 -1.442695, %v3281_v6  ;;  %v4127_v6 = vld [vmem:[%s4248_s1] sm:$0x1f] }
 0x506   :  { %v2721_v8 = vmul.f32 -1.442695, %v3282_v17  ;;  %v2722_v23 = vmul.f32 -1.442695, %v3284_v0 }
 0x507   :  { %3394 = vpow2.f32 %v2720_v21 }
 0x508   :  { %3396 = vpow2.f32 %v2721_v8 }
 0x509   :  { %3398 = vpow2.f32 %v2722_v23 }
 0x50a   :  { %3400 = vtanh.f32 %v3283_v25 }
 0x511   :  { %v3395_v1 = vpop.eup %3394 }
 0x512   :  { %v3397_v26 = vpop.eup %3396  ;;  %v1692_v32 = vadd.f32 1.0, %v3395_v1 }
 0x513   :  { %v1698_v35 = vadd.f32 1.0, %v3397_v26  ;;  %v3399_v39 = vpop.eup %3398 }
 0x514   :  { %3402 = vrcp.f32 %v1692_v32  ;;  %v3401_v40 = vpop.eup %3400  ;;  %v1705_v34 = vadd.f32 1.0, %v3399_v39 }
 0x515   :  { %3404 = vrcp.f32 %v1698_v35 }
 0x516   :  { %3406 = vrcp.f32 %v1705_v34 }
 0x51e   :  { %v3403_v22 = vpop.eup %3402 }
 0x51f   :  { %v3405_v49 = vpop.eup %3404  ;;  %v1709_v51 = vmul.f32 %v3403_v22, %v3401_v40 }
 0x520   :  { %v1708_v54 = vmul.f32 %v3405_v49, %v4054_v53  ;;  %v3407_v43 = vpop.eup %3406  ;;  %v4134_v53 = vld [vmem:[%s4248_s1 + $0x10] sm:$0x1f] }
 0x522   :  { %v4121_v60 = vadd.f32 %v1709_v51, %v1708_v54 }
 0x524   :  { %3408 = vtanh.f32 %v4121_v60 }
 0x52e   :  { %v3409_v61 = vpop.eup %3408 }
 0x52f   :  { %v1712_v63 = vmul.f32 %v3409_v61, %v3407_v43 }
 0x531   :  { %1925 = vmatmul.mubr.f32.vlgmr.msra.gmra.mrb[10].mxu0 %v1712_v63  ;;  %1996 = vmatmul.mubr.f32.vlgmr.msra.gmra.mrb[10].mxu1 %v1712_v63 }
 0x532   :  { %2735 = vmatpush1.msk.msra.mxu0 %vm120_vm0, %v4127_v6  ;;  %2738 = vmatpush1.msk.msra.mxu1 %vm120_vm0, %v4134_v53 }
 0x533   :  { %2099 = vmatprep.mubr.f32.mxu0 %v3462_v3  ;;  %2170 = vmatprep.mubr.f32.mxu1 %v3462_v3 }
 0x534   :  { %3138 = vmatprep.subr.bf16.mxu0 %v3526_v7  ;;  %3170 = vmatprep.subr.bf16.mxu1 %v3537_v11 }
 0x535   :  { %2736 = vmatmul.mubr.msk.f32.vlgmr.msra.gmra.mrb[12].mxu0 %vm116_vm1, %v2733_v5  ;;  %2739 = vmatmul.mubr.msk.f32.vlgmr.msra.gmra.mrb[12].mxu1 %vm116_vm1, %v2733_v5 }
 0x536   :  { %3140 = vmatpush1.bf16.msra.mxu0 %v3551_v15  ;;  %3172 = vmatpush1.bf16.msra.mxu1 %v3564_v19 }
 0x537   :  { %3142 = vmatprep.subr.bf16.mxu0 %v3566_v20  ;;  %3174 = vmatprep.subr.bf16.mxu1 %v3579_v24 }
 0x538   :  { %2241 = vmatprep.mubr.f32.mxu0 %v3462_v3  ;;  %2312 = vmatprep.mubr.f32.mxu1 %v3462_v3 }
 0x53a   :  { %3144 = vmatpush1.bf16.msra.mxu0 %v3592_v28  ;;  %3176 = vmatpush1.bf16.msra.mxu1 %v3594_v29 }
 0x53b   :  { %3146 = vmatprep.subr.bf16.mxu0 %v3606_v33  ;;  %3178 = vmatprep.subr.bf16.mxu1 %v3617_v37 }
 0x53e   :  { %3148 = vmatpush1.bf16.msra.mxu0 %v3629_v41  ;;  %3180 = vmatpush1.bf16.msra.mxu1 %v3642_v45 }
 0x53f   :  { %3150 = vmatprep.subr.bf16.mxu0 %v3644_v46  ;;  %3182 = vmatprep.subr.bf16.mxu1 %v3656_v50 }
 0x542   :  { %3152 = vmatpush1.bf16.msra.mxu0 %v3674_v56  ;;  %3184 = vmatpush1.bf16.msra.mxu1 %v3678_v57 }
 0x543   :  { %3154 = vmatprep.subr.bf16.mxu0 %v3680_v58  ;;  %3186 = vmatprep.subr.bf16.mxu1 %v3692_v62 }
 0x546   :  { %3156 = vmatpush1.bf16.msra.mxu0 %v3710_v10  ;;  %3188 = vmatpush1.bf16.msra.mxu1 %v3714_v12 }
 0x547   :  { %3158 = vmatprep.subr.bf16.mxu0 %v3716_v13  ;;  %3190 = vmatprep.subr.bf16.mxu1 %v3728_v18 }
 0x54a   :  { %3160 = vmatpush1.bf16.msra.mxu0 %v3746_v27  ;;  %3192 = vmatpush1.bf16.msra.mxu1 %v3750_v30 }
 0x54b   :  { %3162 = vmatprep.subr.bf16.mxu0 %v3752_v31  ;;  %3194 = vmatprep.subr.bf16.mxu1 %v3764_v36 }
 0x54e   :  { %3164 = vmatpush1.bf16.msra.mxu0 %v3782_v44  ;;  %3196 = vmatpush1.bf16.msra.mxu1 %v3786_v47 }
 0x54f   :  { %3166 = vmatprep.subr.bf16.mxu0 %v3788_v48  ;;  %3198 = vmatprep.subr.bf16.mxu1 %v3797_v52 }
 0x552   :  { %3168 = vmatpush1.bf16.msra.mxu0 %v3806_v55  ;;  %3200 = vmatpush1.bf16.msra.mxu1 %v3810_v59 }
 0x553   :  { %2744 = vmatprep.subr.msk.mxu0 %vm120_vm0, %v4105_v2  ;;  %2747 = vmatprep.subr.msk.mxu1 %vm120_vm0, %v4112_v4 }
 0x604   :  { %v1926_v9 = vpop.f32.mrb[10].mxu0  ;;  %v1997_v17 = vpop.f32.mrb[10].mxu1 }
 0x605   :  { %v3285_v21 = vadd.f32 %v1926_v9, %v3871_v14  ;;  %v1928_v8 = vpop.f32.mrb[11].mxu0  ;;  %v1999_v0 = vpop.f32.mrb[11].mxu1  ;;  %v3287_v2 = vadd.f32 %v1997_v17, %v3880_v42 }
 0x606   :  { %v3286_v23 = vadd.f32 %v1928_v8, %v3873_v16  ;;  %v3288_v26 = vadd.f32 %v1999_v0, %v3877_v38 }
 0x607   :  { %v2730_v25 = vmul.f32 -1.442695, %v3285_v21 }
 0x608   :  { %v2731_v1 = vmul.f32 -1.442695, %v3286_v23  ;;  %v2732_v32 = vmul.f32 -1.442695, %v3288_v26 }
 0x609   :  { %3410 = vpow2.f32 %v2730_v25 }
 0x60a   :  { %3412 = vpow2.f32 %v2731_v1 }
 0x60b   :  { %3414 = vpow2.f32 %v2732_v32 }
 0x60c   :  { %3416 = vtanh.f32 %v3287_v2 }
 0x613   :  { %v3411_v35 = vpop.eup %3410 }
 0x614   :  { %v3413_v39 = vpop.eup %3412  ;;  %v2009_v4 = vadd.f32 1.0, %v3411_v35 }
 0x615   :  { %v2015_v40 = vadd.f32 1.0, %v3413_v39  ;;  %v3415_v22 = vpop.eup %3414 }
 0x616   :  { %3418 = vrcp.f32 %v2009_v4  ;;  %v3417_v49 = vpop.eup %3416  ;;  %v2022_v43 = vadd.f32 1.0, %v3415_v22 }
 0x617   :  { %3420 = vrcp.f32 %v2015_v40 }
 0x618   :  { %3422 = vrcp.f32 %v2022_v43 }
 0x620   :  { %v3419_v51 = vpop.eup %3418 }
 0x621   :  { %v3421_v34 = vpop.eup %3420  ;;  %v2026_v54 = vmul.f32 %v3419_v51, %v3417_v49 }
 0x622   :  { %v2025_v61 = vmul.f32 %v3421_v34, %v4121_v60  ;;  %v3423_v5 = vpop.eup %3422  ;;  %v2743_v60 = vld [vmem:[%s4250_s0 + $0xe] sm:$0x3] }
 0x624   :  { %v4188_v63 = vadd.f32 %v2026_v54, %v2025_v61 }
 0x626   :  { %3424 = vtanh.f32 %v4188_v63 }
 0x630   :  { %v3425_v9 = vpop.eup %3424 }
 0x631   :  { %v2029_v17 = vmul.f32 %v3425_v9, %v3423_v5 }
 0x633   :  { %2242 = vmatmul.mubr.f32.vlgmr.msra.gmra.mrb[12].mxu0 %v2029_v17  ;;  %2313 = vmatmul.mubr.f32.vlgmr.msra.gmra.mrb[12].mxu1 %v2029_v17 }
 0x634   :  { %2745 = vmatpush1.msk.msra.mxu0 %vm120_vm0, %v4127_v6  ;;  %2748 = vmatpush1.msk.msra.mxu1 %vm120_vm0, %v4134_v53 }
 0x635   :  { %2416 = vmatprep.mubr.f32.mxu0 %v3462_v3  ;;  %2487 = vmatprep.mubr.f32.mxu1 %v3462_v3 }
 0x636   :  { %3202 = vmatprep.subr.bf16.mxu0 %v3526_v7  ;;  %3234 = vmatprep.subr.bf16.mxu1 %v3537_v11 }
 0x637   :  { %2746 = vmatmul.mubr.msk.f32.vlgmr.msra.gmra.mrb[14].mxu0 %vm116_vm1, %v2743_v60  ;;  %2749 = vmatmul.mubr.msk.f32.vlgmr.msra.gmra.mrb[14].mxu1 %vm116_vm1, %v2743_v60 }
 0x638   :  { %3204 = vmatpush1.bf16.msra.mxu0 %v3551_v15  ;;  %3236 = vmatpush1.bf16.msra.mxu1 %v3564_v19 }
 0x639   :  { %3206 = vmatprep.subr.bf16.mxu0 %v3566_v20  ;;  %3238 = vmatprep.subr.bf16.mxu1 %v3579_v24 }
 0x63a   :  { %2558 = vmatprep.mubr.f32.mxu0 %v3462_v3  ;;  %2629 = vmatprep.mubr.f32.mxu1 %v3462_v3 }
 0x63c   :  { %3208 = vmatpush1.bf16.msra.mxu0 %v3592_v28  ;;  %3240 = vmatpush1.bf16.msra.mxu1 %v3594_v29 }
 0x63d   :  { %3210 = vmatprep.subr.bf16.mxu0 %v3606_v33  ;;  %3242 = vmatprep.subr.bf16.mxu1 %v3617_v37 }
 0x640   :  { %3212 = vmatpush1.bf16.msra.mxu0 %v3629_v41  ;;  %3244 = vmatpush1.bf16.msra.mxu1 %v3642_v45 }
 0x641   :  { %3214 = vmatprep.subr.bf16.mxu0 %v3644_v46  ;;  %3246 = vmatprep.subr.bf16.mxu1 %v3656_v50 }
 0x644   :  { %3216 = vmatpush1.bf16.msra.mxu0 %v3674_v56  ;;  %3248 = vmatpush1.bf16.msra.mxu1 %v3678_v57 }
 0x645   :  { %3218 = vmatprep.subr.bf16.mxu0 %v3680_v58  ;;  %3250 = vmatprep.subr.bf16.mxu1 %v3692_v62 }
 0x648   :  { %3220 = vmatpush1.bf16.msra.mxu0 %v3710_v10  ;;  %3252 = vmatpush1.bf16.msra.mxu1 %v3714_v12 }
 0x649   :  { %3222 = vmatprep.subr.bf16.mxu0 %v3716_v13  ;;  %3254 = vmatprep.subr.bf16.mxu1 %v3728_v18 }
 0x64c   :  { %3224 = vmatpush1.bf16.msra.mxu0 %v3746_v27  ;;  %3256 = vmatpush1.bf16.msra.mxu1 %v3750_v30 }
 0x64d   :  { %3226 = vmatprep.subr.bf16.mxu0 %v3752_v31  ;;  %3258 = vmatprep.subr.bf16.mxu1 %v3764_v36 }
 0x650   :  { %3228 = vmatpush1.bf16.msra.mxu0 %v3782_v44  ;;  %3260 = vmatpush1.bf16.msra.mxu1 %v3786_v47 }
 0x651   :  { %3230 = vmatprep.subr.bf16.mxu0 %v3788_v48  ;;  %3262 = vmatprep.subr.bf16.mxu1 %v3797_v52 }
 0x654   :  { %3232 = vmatpush1.bf16.msra.mxu0 %v3806_v55  ;;  %3264 = vmatpush1.bf16.msra.mxu1 %v3810_v59 }
 0x706   :  { %v2243_v3 = vpop.f32.mrb[12].mxu0  ;;  %v2314_v7 = vpop.f32.mrb[12].mxu1 }
 0x707   :  { %v3289_v11 = vadd.f32 %v2243_v3, %v3871_v14  ;;  %v2245_v15 = vpop.f32.mrb[13].mxu0  ;;  %v2316_v19 = vpop.f32.mrb[13].mxu1  ;;  %v3291_v37 = vadd.f32 %v2314_v7, %v3880_v42 }
 0x708   :  { %v3290_v20 = vadd.f32 %v2245_v15, %v3873_v16  ;;  %v3292_v29 = vadd.f32 %v2316_v19, %v3877_v38 }
 0x709   :  { %v2740_v24 = vmul.f32 -1.442695, %v3289_v11 }
 0x70a   :  { %v2741_v28 = vmul.f32 -1.442695, %v3290_v20  ;;  %v2742_v33 = vmul.f32 -1.442695, %v3292_v29 }
 0x70b   :  { %3426 = vpow2.f32 %v2740_v24 }
 0x70c   :  { %3428 = vpow2.f32 %v2741_v28 }
 0x70d   :  { %3430 = vpow2.f32 %v2742_v33 }
 0x70e   :  { %3432 = vtanh.f32 %v3291_v37 }
 0x715   :  { %v3427_v41 = vpop.eup %3426 }
 0x716   :  { %v3429_v45 = vpop.eup %3428  ;;  %v2326_v46 = vadd.f32 1.0, %v3427_v41 }
 0x717   :  { %v2332_v50 = vadd.f32 1.0, %v3429_v45  ;;  %v3431_v56 = vpop.eup %3430 }
 0x718   :  { %3434 = vrcp.f32 %v2326_v46  ;;  %v3433_v57 = vpop.eup %3432  ;;  %v2339_v12 = vadd.f32 1.0, %v3431_v56 }
 0x719   :  { %3436 = vrcp.f32 %v2332_v50 }
 0x71a   :  { %3438 = vrcp.f32 %v2339_v12 }
 0x722   :  { %v3435_v58 = vpop.eup %3434 }
 0x723   :  { %v3437_v62 = vpop.eup %3436  ;;  %v2343_v10 = vmul.f32 %v3435_v58, %v3433_v57 }
 0x724   :  { %v2342_v13 = vmul.f32 %v3437_v62, %v4188_v63  ;;  %v3439_v27 = vpop.eup %3438 }
 0x726   :  { %v2344_v18 = vadd.f32 %v2343_v10, %v2342_v13 }
 0x728   :  { %3440 = vtanh.f32 %v2344_v18 }
 0x732   :  { %v3441_v30 = vpop.eup %3440 }
 0x733   :  { %v2346_v31 = vmul.f32 %v3441_v30, %v3439_v27 }
 0x735   :  { %2559 = vmatmul.mubr.f32.vlgmr.msra.gmra.mrb[14].mxu0 %v2346_v31  ;;  %2630 = vmatmul.mubr.f32.vlgmr.msra.gmra.mrb[14].mxu1 %v2346_v31 }
 0x808   :  { %v2560_v36 = vpop.f32.mrb[14].mxu0  ;;  %v2631_v44 = vpop.f32.mrb[14].mxu1 }
 0x809   :  { %v3293_v47 = vadd.f32 %v2560_v36, %v3871_v14  ;;  %v2562_v48 = vpop.f32.mrb[15].mxu0  ;;  %v2633_v52 = vpop.f32.mrb[15].mxu1  ;;  %v3295_v8 = vadd.f32 %v2631_v44, %v3880_v42 }
 0x80a   :  { %v3294_v55 = vadd.f32 %v2562_v48, %v3873_v16  ;;  %v3296_v53 = vadd.f32 %v2633_v52, %v3877_v38 }
 0x80b   :  { %v2750_v59 = vmul.f32 -1.442695, %v3293_v47 }
 0x80c   :  { %v2751_v6 = vmul.f32 -1.442695, %v3294_v55  ;;  %v2752_v21 = vmul.f32 -1.442695, %v3296_v53 }
 0x80d   :  { %3442 = vpow2.f32 %v2750_v59 }
 0x80e   :  { %3444 = vpow2.f32 %v2751_v6 }
 0x80f   :  { %3446 = vpow2.f32 %v2752_v21 }
 0x810   :  { %3448 = vtanh.f32 %v3295_v8 }
 0x817   :  { %v3443_v0 = vpop.eup %3442 }
 0x818   :  { %v3445_v23 = vpop.eup %3444  ;;  %v2643_v25 = vadd.f32 1.0, %v3443_v0 }
 0x819   :  { %v2649_v1 = vadd.f32 1.0, %v3445_v23  ;;  %v3447_v14 = vpop.eup %3446 }
 0x81a   :  { %3450 = vrcp.f32 %v2643_v25  ;;  %v3449_v26 = vpop.eup %3448  ;;  %v2656_v35 = vadd.f32 1.0, %v3447_v14 }
 0x81b   :  { %3452 = vrcp.f32 %v2649_v1 }
 0x81c   :  { %3454 = vrcp.f32 %v2656_v35 }
 0x824   :  { %v3451_v16 = vpop.eup %3450 }
 0x825   :  { %v3453_v32 = vpop.eup %3452  ;;  %v2660_v2 = vmul.f32 %v3451_v16, %v3449_v26 }
 0x826   :  { %v2659_v39 = vmul.f32 %v3453_v32, %v2344_v18  ;;  %v3455_v38 = vpop.eup %3454 }
 0x828   :  { %v2661_v4 = vadd.f32 %v2660_v2, %v2659_v39 }
 0x82a   :  { %3456 = vtanh.f32 %v2661_v4  ;;  %2665 = vst [vmem:[#allocation3] sm:$0x3] %v2661_v4 }
 0x834   :  { %v3457_v42 = vpop.eup %3456 }
 0x835   :  { %v2663_v40 = vmul.f32 %v3457_v42, %v3455_v38 }
 0x837   :  { %2664 = vst [vmem:[#allocation2] sm:$0x3] %v2663_v40  ;;  %2669 = vst [vmem:[%s4252_s4] sm:$0x3] %v2663_v40 }

</bundles_post_ra>
